<compile_context>
chip_gen: v7x
topology: tpu7x:2x2x1
jax: 0.10.0
libtpu: 0.0.40
codegen_flags: <defaults>
</compile_context>

<pallas_src>
import jax
import jax.numpy as jnp
from jax import lax
from jax.experimental import pallas as pl
from jax.experimental.pallas import tpu as pltpu

EPS = 1e-5
LANE = 128     # lane width (fast / last axis)
SUBLANE = 8    # f32 sublane width (second-to-last axis)


def _gelu_tanh(x):
    # tanh-approximate GELU (rides the EUP slot on TPU)
    c = 0.7978845608028654  # sqrt(2/pi)
    return 0.5 * x * (1.0 + jnp.tanh(c * (x + 0.044715 * x * x * x)))


def _round_up(v, m):
    return (v + m - 1) // m * m


def _make_kernel(c_true, c_pad):
    """Kernel specialised on the true channel count (masked LN statistics)."""
    needs_mask = c_pad != c_true
    inv_c = 1.0 / c_true

    def kernel(x_ref, g1_ref, b1_ref, wmix_ref, bmix_ref,
               g2_ref, b2_ref, wln_ref, bln_ref, o_ref):
        x = x_ref[...].astype(jnp.float32)            # (TM, Cp)

        # Hoisted parameter loads (read exactly once per grid step).
        g1 = g1_ref[...]; b1 = b1_ref[...]
        bmix = bmix_ref[...]
        g2 = g2_ref[...]; b2 = b2_ref[...]
        bln = bln_ref[...]

        if needs_mask:
            lane_id = lax.broadcasted_iota(jnp.int32, x.shape, 1)
            cmask = lane_id < c_true

        def layer_norm(v, g, b):
            # Padded channel lanes of `v` are guaranteed zero, so sum / C_true
            # is the correct mean.
            mu = jnp.sum(v, axis=-1, keepdims=True) * inv_c
            vc = v - mu
            if needs_mask:
                vc = jnp.where(cmask, vc, 0.0)        # variance over true C only
            var = jnp.sum(vc * vc, axis=-1, keepdims=True) * inv_c
            # gamma/beta are zero-padded -> padded output lanes stay zero.
            return vc * lax.rsqrt(var + EPS) * g + b

        # ---- norm1 + mixer (Linear + GELU), bf16 operands, f32 accumulate ----
        h = layer_norm(x, g1, b1)
        h = jnp.dot(h.astype(jnp.bfloat16), wmix_ref[...],
                    preferred_element_type=jnp.float32) + bmix
        h = _gelu_tanh(h)

        # ---- residual ----
        x = x + h

        # ---- norm2 + final Linear ----
        h2 = layer_norm(x, g2, b2)
        out = jnp.dot(h2.astype(jnp.bfloat16), wln_ref[...],
                      preferred_element_type=jnp.float32) + bln
        o_ref[...] = out.astype(o_ref.dtype)

    return kernel


def _build_and_run(kernel, xp, vec_params, wmix, wln, tile_m, c_pad,
                   cost, single_buffer_weights):
    m_pad = xp.shape[0]
    g1, b1, bmix, g2, b2, bln = vec_params

    vec_spec = pl.BlockSpec((1, c_pad), lambda i: (0, 0))
    if single_buffer_weights:
        # Constant index_map -> no need to double-buffer the (C,C) weights;
        # frees VMEM for bigger activation tiles (matters most on v7x, 64 MiB).
        mat_spec = pl.BlockSpec((c_pad, c_pad), lambda i: (0, 0),
                                pipeline_mode=pl.Buffered(1))
    else:
        mat_spec = pl.BlockSpec((c_pad, c_pad), lambda i: (0, 0))

    return pl.pallas_call(
        kernel,
        out_shape=jax.ShapeDtypeStruct((m_pad, c_pad), xp.dtype),
        grid_spec=pltpu.PrefetchScalarGridSpec(
            num_scalar_prefetch=0,
            grid=(m_pad // tile_m,),
            in_specs=[
                pl.BlockSpec((tile_m, c_pad), lambda i: (i, 0)),   # x tile
                vec_spec, vec_spec,                                 # gamma1, beta1
                mat_spec, vec_spec,                                 # Wmix, bmix
                vec_spec, vec_spec,                                 # gamma2, beta2
                mat_spec, vec_spec,                                 # Wln, bln
            ],
            out_specs=pl.BlockSpec((tile_m, c_pad), lambda i: (i, 0)),
        ),
        compiler_params=pltpu.CompilerParams(
            dimension_semantics=("parallel",),
            vmem_limit_bytes=64 * 1024 * 1024,
        ),
        cost_estimate=cost,
    )(xp, g1, b1, wmix, bmix, g2, b2, wln, bln)


def metaformer_block(x, params, *, tile_m=256):
    """x: (B, N, C) channels-last tokens.  Returns (B, N, C).

    tile_m: tokens per grid step.  Sweep 256-1024 in production; larger on
    v5e/v6e (128 MiB VMEM), ~half on v7x (64 MiB VMEM).
    """
    B, N, C = x.shape
    M = B * N
    g1, b1, wmix, bmix, g2, b2, wln, bln = params

    # Lane-dense channel padding (multiple of 128) + token padding so the grid
    # divides evenly.  Padded channel lanes of every operand are zero and stay
    # zero through the whole block (see kernel comments).
    c_pad = _round_up(C, LANE)
    tile_m_eff = min(_round_up(tile_m, SUBLANE), _round_up(M, SUBLANE))
    m_pad = _round_up(M, tile_m_eff)

    x2d = x.reshape(M, C)
    xp = jnp.pad(x2d, ((0, m_pad - M), (0, c_pad - C)))

    def pad_vec(v):                 # (C,) -> (1, Cp) f32, zero-padded lanes
        return jnp.pad(v.astype(jnp.float32), (0, c_pad - C)).reshape(1, c_pad)

    def pad_mat(w):                 # (C, C) -> (Cp, Cp) bf16 (stored as W.T)
        return jnp.pad(w, ((0, c_pad - C), (0, c_pad - C))).astype(jnp.bfloat16)

    vec_params = (pad_vec(g1), pad_vec(b1), pad_vec(bmix),
                  pad_vec(g2), pad_vec(b2), pad_vec(bln))
    wmix_p = pad_mat(wmix)
    wln_p = pad_mat(wln)

    cost = pl.CostEstimate(
        flops=int(2 * 2 * m_pad * c_pad * c_pad + 16 * m_pad * c_pad),
        transcendentals=int(m_pad * c_pad + 2 * m_pad),
        bytes_accessed=int(2 * m_pad * c_pad * 4          # x in + out
                           + 2 * c_pad * c_pad * 2        # two bf16 weights
                           + 6 * c_pad * 4),              # vectors
    )

    kernel = _make_kernel(C, c_pad)
    try:
        out = _build_and_run(kernel, xp, vec_params, wmix_p, wln_p,
                             tile_m_eff, c_pad, cost,
                             single_buffer_weights=True)
    except Exception:
        # pipeline_mode=pl.Buffered(1) not supported by this jax build; the
        # default double-buffered weights are functionally identical.
        out = _build_and_run(kernel, xp, vec_params, wmix_p, wln_p,
                             tile_m_eff, c_pad, cost,
                             single_buffer_weights=False)

    return out[:M, :C].reshape(B, N, C)


def reference(x, params):
    """Pure-JAX reference using the same bf16-operand / f32-accumulate matmuls."""
    g1, b1, wmix, bmix, g2, b2, wln, bln = params
    x = x.astype(jnp.float32)

    def ln(v, g, b):
        mu = jnp.mean(v, axis=-1, keepdims=True)
        var = jnp.mean((v - mu) ** 2, axis=-1, keepdims=True)
        return (v - mu) * lax.rsqrt(var + EPS) * g + b

    def bf16_matmul(a, w):
        a16 = a.astype(jnp.bfloat16).astype(jnp.float32)
        w16 = w.astype(jnp.bfloat16).astype(jnp.float32)
        return jnp.dot(a16, w16, preferred_element_type=jnp.float32)

    h = _gelu_tanh(bf16_matmul(ln(x, g1, b1), wmix) + bmix)
    x = x + h
    return bf16_matmul(ln(x, g2, b2), wln) + bln


def init_params(key, C):
    ks = jax.random.split(key, 4)
    bound = float(C) ** -0.5
    # matrices stored as (in, out) == PyTorch W.T so the kernel does x @ W
    wmix = jax.random.uniform(ks[0], (C, C), jnp.float32, -bound, bound)
    bmix = jax.random.uniform(ks[1], (C,), jnp.float32, -bound, bound)
    wln = jax.random.uniform(ks[2], (C, C), jnp.float32, -bound, bound)
    bln = jax.random.uniform(ks[3], (C,), jnp.float32, -bound, bound)
    g1 = jnp.ones((C,), jnp.float32)
    b1 = jnp.zeros((C,), jnp.float32)
    g2 = jnp.ones((C,), jnp.float32)
    b2 = jnp.zeros((C,), jnp.float32)
    return (g1, b1, wmix, bmix, g2, b2, wln, bln)


if __name__ == "__main__":
    B, N, C = 2, 8, 32   # batch=2, seq=8, channels=32
    key = jax.random.PRNGKey(0)
    kx, kp = jax.random.split(key)
    x = jax.random.normal(kx, (B, N, C), jnp.float32)
    params = init_params(kp, C)

    out = metaformer_block(x, params, tile_m=256)
    out = jax.block_until_ready(out)

    ref = reference(x, params)
    assert out.shape == (B, N, C)
    # bf16 matmul operands (both paths) -> modest tolerance
    assert jnp.allclose(out, ref, atol=1e-2, rtol=1e-2), "mismatch vs reference"
    print("KERNEL_OK")
</pallas_src>

<mosaic_0001>
module attributes {stable_mosaic.version = 11 : i64} {
  func.func @kernel(%arg0: i32, %arg1: memref<16x128xf32, #tpu.memory_space<vmem>>, %arg2: memref<1x128xf32, #tpu.memory_space<vmem>>, %arg3: memref<1x128xf32, #tpu.memory_space<vmem>>, %arg4: memref<128x128xbf16, #tpu.memory_space<vmem>>, %arg5: memref<1x128xf32, #tpu.memory_space<vmem>>, %arg6: memref<1x128xf32, #tpu.memory_space<vmem>>, %arg7: memref<1x128xf32, #tpu.memory_space<vmem>>, %arg8: memref<128x128xbf16, #tpu.memory_space<vmem>>, %arg9: memref<1x128xf32, #tpu.memory_space<vmem>>, %arg10: memref<16x128xf32, #tpu.memory_space<vmem>>) attributes {dimension_semantics = [#tpu.dimension_semantics<parallel>], iteration_bounds = array<i64: 1>, scalar_prefetch = 0 : i64, scratch_operands = 0 : i64, tpu.core_type = #tpu.core_type<tc>, window_params = [{transform_indices = @transform_0, window_bounds = array<i64: 16, 128>}, {pipeline_mode = #tpu.pipeline_mode<synchronous>, transform_indices = @transform_1, window_bounds = array<i64: 1, 128>}, {pipeline_mode = #tpu.pipeline_mode<synchronous>, transform_indices = @transform_2, window_bounds = array<i64: 1, 128>}, {pipeline_mode = #tpu.pipeline_mode<synchronous>, transform_indices = @transform_3, window_bounds = array<i64: 128, 128>}, {pipeline_mode = #tpu.pipeline_mode<synchronous>, transform_indices = @transform_4, window_bounds = array<i64: 1, 128>}, {pipeline_mode = #tpu.pipeline_mode<synchronous>, transform_indices = @transform_5, window_bounds = array<i64: 1, 128>}, {pipeline_mode = #tpu.pipeline_mode<synchronous>, transform_indices = @transform_6, window_bounds = array<i64: 1, 128>}, {pipeline_mode = #tpu.pipeline_mode<synchronous>, transform_indices = @transform_7, window_bounds = array<i64: 128, 128>}, {pipeline_mode = #tpu.pipeline_mode<synchronous>, transform_indices = @transform_8, window_bounds = array<i64: 1, 128>}, {transform_indices = @transform_9, window_bounds = array<i64: 16, 128>}]} {
    %c0 = arith.constant 0 : index
    %c0_0 = arith.constant 0 : index
    %0 = vector.load %arg1[%c0, %c0_0] : memref<16x128xf32, #tpu.memory_space<vmem>>, vector<16x128xf32>
    %c0_1 = arith.constant 0 : index
    %c0_2 = arith.constant 0 : index
    %1 = vector.load %arg2[%c0_1, %c0_2] : memref<1x128xf32, #tpu.memory_space<vmem>>, vector<1x128xf32>
    %c0_3 = arith.constant 0 : index
    %c0_4 = arith.constant 0 : index
    %2 = vector.load %arg3[%c0_3, %c0_4] : memref<1x128xf32, #tpu.memory_space<vmem>>, vector<1x128xf32>
    %c0_5 = arith.constant 0 : index
    %c0_6 = arith.constant 0 : index
    %3 = vector.load %arg5[%c0_5, %c0_6] : memref<1x128xf32, #tpu.memory_space<vmem>>, vector<1x128xf32>
    %c0_7 = arith.constant 0 : index
    %c0_8 = arith.constant 0 : index
    %4 = vector.load %arg6[%c0_7, %c0_8] : memref<1x128xf32, #tpu.memory_space<vmem>>, vector<1x128xf32>
    %c0_9 = arith.constant 0 : index
    %c0_10 = arith.constant 0 : index
    %5 = vector.load %arg7[%c0_9, %c0_10] : memref<1x128xf32, #tpu.memory_space<vmem>>, vector<1x128xf32>
    %c0_11 = arith.constant 0 : index
    %c0_12 = arith.constant 0 : index
    %6 = vector.load %arg9[%c0_11, %c0_12] : memref<1x128xf32, #tpu.memory_space<vmem>>, vector<1x128xf32>
    %7 = tpu.iota {dimensions = array<i32: 1>} : vector<16x128xi32>
    %c32_i32 = arith.constant 32 : i32
    %8 = vector.broadcast %c32_i32 : i32 to vector<16x128xi32>
    %9 = arith.cmpi slt, %7, %8 : vector<16x128xi32>
    %cst = arith.constant dense<0.000000e+00> : vector<16xf32>
    %10 = vector.multi_reduction <add>, %0, %cst [1] : vector<16x128xf32> to vector<16xf32>
    %11 = vector.shape_cast %10 : vector<16xf32> to vector<16x1xf32>
    %cst_13 = arith.constant 3.125000e-02 : f32
    %12 = vector.broadcast %cst_13 : f32 to vector<16x1xf32>
    %13 = arith.mulf %11, %12 : vector<16x1xf32>
    %14 = vector.broadcast %13 : vector<16x1xf32> to vector<16x128xf32>
    %15 = arith.subf %0, %14 : vector<16x128xf32>
    %cst_14 = arith.constant 0.000000e+00 : f32
    %16 = vector.broadcast %cst_14 : f32 to vector<16x128xf32>
    %17 = arith.select %9, %15, %16 : vector<16x128xi1>, vector<16x128xf32>
    %18 = arith.mulf %17, %17 : vector<16x128xf32>
    %cst_15 = arith.constant dense<0.000000e+00> : vector<16xf32>
    %19 = vector.multi_reduction <add>, %18, %cst_15 [1] : vector<16x128xf32> to vector<16xf32>
    %20 = vector.shape_cast %19 : vector<16xf32> to vector<16x1xf32>
    %cst_16 = arith.constant 3.125000e-02 : f32
    %21 = vector.broadcast %cst_16 : f32 to vector<16x1xf32>
    %22 = arith.mulf %20, %21 : vector<16x1xf32>
    %cst_17 = arith.constant 9.99999974E-6 : f32
    %23 = vector.broadcast %cst_17 : f32 to vector<16x1xf32>
    %24 = arith.addf %22, %23 : vector<16x1xf32>
    %25 = math.rsqrt %24 : vector<16x1xf32>
    %26 = vector.broadcast %25 : vector<16x1xf32> to vector<16x128xf32>
    %27 = arith.mulf %17, %26 : vector<16x128xf32>
    %28 = vector.broadcast %1 : vector<1x128xf32> to vector<16x128xf32>
    %29 = arith.mulf %27, %28 : vector<16x128xf32>
    %30 = vector.broadcast %2 : vector<1x128xf32> to vector<16x128xf32>
    %31 = arith.addf %29, %30 : vector<16x128xf32>
    %32 = arith.truncf %31 : vector<16x128xf32> to vector<16x128xbf16>
    %c0_18 = arith.constant 0 : index
    %c0_19 = arith.constant 0 : index
    %33 = vector.load %arg4[%c0_18, %c0_19] : memref<128x128xbf16, #tpu.memory_space<vmem>>, vector<128x128xbf16>
    %cst_20 = arith.constant dense<0.000000e+00> : vector<16x128xf32>
    %34 = tpu.matmul %32, %33, %cst_20 {dimension_numbers = #tpu.dot_dimension_numbers<[1], [0], [0], [1], [0, 0, 1, 1], [], []>} : vector<16x128xbf16>, vector<128x128xbf16>, vector<16x128xf32> -> vector<16x128xf32>
    %35 = vector.broadcast %3 : vector<1x128xf32> to vector<16x128xf32>
    %36 = arith.addf %34, %35 : vector<16x128xf32>
    %cst_21 = arith.constant 5.000000e-01 : f32
    %37 = vector.broadcast %cst_21 : f32 to vector<16x128xf32>
    %38 = arith.mulf %37, %36 : vector<16x128xf32>
    %cst_22 = arith.constant 4.471500e-02 : f32
    %39 = vector.broadcast %cst_22 : f32 to vector<16x128xf32>
    %40 = arith.mulf %39, %36 : vector<16x128xf32>
    %41 = arith.mulf %40, %36 : vector<16x128xf32>
    %42 = arith.mulf %41, %36 : vector<16x128xf32>
    %43 = arith.addf %36, %42 : vector<16x128xf32>
    %cst_23 = arith.constant 0.797884583 : f32
    %44 = vector.broadcast %cst_23 : f32 to vector<16x128xf32>
    %45 = arith.mulf %44, %43 : vector<16x128xf32>
    %46 = math.tanh %45 : vector<16x128xf32>
    %cst_24 = arith.constant 1.000000e+00 : f32
    %47 = vector.broadcast %cst_24 : f32 to vector<16x128xf32>
    %48 = arith.addf %47, %46 : vector<16x128xf32>
    %49 = arith.mulf %38, %48 : vector<16x128xf32>
    %50 = arith.addf %0, %49 : vector<16x128xf32>
    %cst_25 = arith.constant dense<0.000000e+00> : vector<16xf32>
    %51 = vector.multi_reduction <add>, %50, %cst_25 [1] : vector<16x128xf32> to vector<16xf32>
    %52 = vector.shape_cast %51 : vector<16xf32> to vector<16x1xf32>
    %cst_26 = arith.constant 3.125000e-02 : f32
    %53 = vector.broadcast %cst_26 : f32 to vector<16x1xf32>
    %54 = arith.mulf %52, %53 : vector<16x1xf32>
    %55 = vector.broadcast %54 : vector<16x1xf32> to vector<16x128xf32>
    %56 = arith.subf %50, %55 : vector<16x128xf32>
    %cst_27 = arith.constant 0.000000e+00 : f32
    %57 = vector.broadcast %cst_27 : f32 to vector<16x128xf32>
    %58 = arith.select %9, %56, %57 : vector<16x128xi1>, vector<16x128xf32>
    %59 = arith.mulf %58, %58 : vector<16x128xf32>
    %cst_28 = arith.constant dense<0.000000e+00> : vector<16xf32>
    %60 = vector.multi_reduction <add>, %59, %cst_28 [1] : vector<16x128xf32> to vector<16xf32>
    %61 = vector.shape_cast %60 : vector<16xf32> to vector<16x1xf32>
    %cst_29 = arith.constant 3.125000e-02 : f32
    %62 = vector.broadcast %cst_29 : f32 to vector<16x1xf32>
    %63 = arith.mulf %61, %62 : vector<16x1xf32>
    %cst_30 = arith.constant 9.99999974E-6 : f32
    %64 = vector.broadcast %cst_30 : f32 to vector<16x1xf32>
    %65 = arith.addf %63, %64 : vector<16x1xf32>
    %66 = math.rsqrt %65 : vector<16x1xf32>
    %67 = vector.broadcast %66 : vector<16x1xf32> to vector<16x128xf32>
    %68 = arith.mulf %58, %67 : vector<16x128xf32>
    %69 = vector.broadcast %4 : vector<1x128xf32> to vector<16x128xf32>
    %70 = arith.mulf %68, %69 : vector<16x128xf32>
    %71 = vector.broadcast %5 : vector<1x128xf32> to vector<16x128xf32>
    %72 = arith.addf %70, %71 : vector<16x128xf32>
    %73 = arith.truncf %72 : vector<16x128xf32> to vector<16x128xbf16>
    %c0_31 = arith.constant 0 : index
    %c0_32 = arith.constant 0 : index
    %74 = vector.load %arg8[%c0_31, %c0_32] : memref<128x128xbf16, #tpu.memory_space<vmem>>, vector<128x128xbf16>
    %cst_33 = arith.constant dense<0.000000e+00> : vector<16x128xf32>
    %75 = tpu.matmul %73, %74, %cst_33 {dimension_numbers = #tpu.dot_dimension_numbers<[1], [0], [0], [1], [0, 0, 1, 1], [], []>} : vector<16x128xbf16>, vector<128x128xbf16>, vector<16x128xf32> -> vector<16x128xf32>
    %76 = vector.broadcast %6 : vector<1x128xf32> to vector<16x128xf32>
    %77 = arith.addf %75, %76 : vector<16x128xf32>
    %c0_34 = arith.constant 0 : index
    %c0_35 = arith.constant 0 : index
    %78 = vector.load %arg10[%c0_34, %c0_35] : memref<16x128xf32, #tpu.memory_space<vmem>>, vector<16x128xf32>
    tpu.vector_store %arg10[%c0_34, %c0_35], %77 {strides = array<i32>} : memref<16x128xf32, #tpu.memory_space<vmem>>, vector<16x128xf32>,
    return
  }
  func.func @transform_0(%arg0: i32) -> (i32, i32) {
    %c0_i32 = arith.constant 0 : i32
    %c0_i32_0 = arith.constant 0 : i32
    return %arg0, %c0_i32 : i32, i32
  }
  func.func @transform_1(%arg0: i32) -> (i32, i32) {
    %c0_i32 = arith.constant 0 : i32
    %c0_i32_0 = arith.constant 0 : i32
    %c0_i32_1 = arith.constant 0 : i32
    return %c0_i32, %c0_i32_0 : i32, i32
  }
  func.func @transform_2(%arg0: i32) -> (i32, i32) {
    %c0_i32 = arith.constant 0 : i32
    %c0_i32_0 = arith.constant 0 : i32
    %c0_i32_1 = arith.constant 0 : i32
    return %c0_i32, %c0_i32_0 : i32, i32
  }
  func.func @transform_3(%arg0: i32) -> (i32, i32) {
    %c0_i32 = arith.constant 0 : i32
    %c0_i32_0 = arith.constant 0 : i32
    %c0_i32_1 = arith.constant 0 : i32
    return %c0_i32, %c0_i32_0 : i32, i32
  }
  func.func @transform_4(%arg0: i32) -> (i32, i32) {
    %c0_i32 = arith.constant 0 : i32
    %c0_i32_0 = arith.constant 0 : i32
    %c0_i32_1 = arith.constant 0 : i32
    return %c0_i32, %c0_i32_0 : i32, i32
  }
  func.func @transform_5(%arg0: i32) -> (i32, i32) {
    %c0_i32 = arith.constant 0 : i32
    %c0_i32_0 = arith.constant 0 : i32
    %c0_i32_1 = arith.constant 0 : i32
    return %c0_i32, %c0_i32_0 : i32, i32
  }
  func.func @transform_6(%arg0: i32) -> (i32, i32) {
    %c0_i32 = arith.constant 0 : i32
    %c0_i32_0 = arith.constant 0 : i32
    %c0_i32_1 = arith.constant 0 : i32
    return %c0_i32, %c0_i32_0 : i32, i32
  }
  func.func @transform_7(%arg0: i32) -> (i32, i32) {
    %c0_i32 = arith.constant 0 : i32
    %c0_i32_0 = arith.constant 0 : i32
    %c0_i32_1 = arith.constant 0 : i32
    return %c0_i32, %c0_i32_0 : i32, i32
  }
  func.func @transform_8(%arg0: i32) -> (i32, i32) {
    %c0_i32 = arith.constant 0 : i32
    %c0_i32_0 = arith.constant 0 : i32
    %c0_i32_1 = arith.constant 0 : i32
    return %c0_i32, %c0_i32_0 : i32, i32
  }
  func.func @transform_9(%arg0: i32) -> (i32, i32) {
    %c0_i32 = arith.constant 0 : i32
    %c0_i32_0 = arith.constant 0 : i32
    return %arg0, %c0_i32 : i32, i32
  }
}

module attributes {stable_mosaic.version = 11 : i64} {
  func.func @kernel(%arg0: i32, %arg1: memref<16x128xf32, #tpu.memory_space<vmem>>, %arg2: memref<1x128xf32, #tpu.memory_space<vmem>>, %arg3: memref<1x128xf32, #tpu.memory_space<vmem>>, %arg4: memref<128x128xbf16, #tpu.memory_space<vmem>>, %arg5: memref<1x128xf32, #tpu.memory_space<vmem>>, %arg6: memref<1x128xf32, #tpu.memory_space<vmem>>, %arg7: memref<1x128xf32, #tpu.memory_space<vmem>>, %arg8: memref<128x128xbf16, #tpu.memory_space<vmem>>, %arg9: memref<1x128xf32, #tpu.memory_space<vmem>>, %arg10: memref<16x128xf32, #tpu.memory_space<vmem>>) attributes {dimension_semantics = [#tpu.dimension_semantics<parallel>], iteration_bounds = array<i64: 1>, scalar_prefetch = 0 : i64, scratch_operands = 0 : i64, tpu.core_type = #tpu.core_type<tc>, window_params = [{transform_indices = @transform_0, window_bounds = array<i64: 16, 128>}, {pipeline_mode = #tpu.pipeline_mode<synchronous>, transform_indices = @transform_1, window_bounds = array<i64: 1, 128>}, {pipeline_mode = #tpu.pipeline_mode<synchronous>, transform_indices = @transform_2, window_bounds = array<i64: 1, 128>}, {pipeline_mode = #tpu.pipeline_mode<synchronous>, transform_indices = @transform_3, window_bounds = array<i64: 128, 128>}, {pipeline_mode = #tpu.pipeline_mode<synchronous>, transform_indices = @transform_4, window_bounds = array<i64: 1, 128>}, {pipeline_mode = #tpu.pipeline_mode<synchronous>, transform_indices = @transform_5, window_bounds = array<i64: 1, 128>}, {pipeline_mode = #tpu.pipeline_mode<synchronous>, transform_indices = @transform_6, window_bounds = array<i64: 1, 128>}, {pipeline_mode = #tpu.pipeline_mode<synchronous>, transform_indices = @transform_7, window_bounds = array<i64: 128, 128>}, {pipeline_mode = #tpu.pipeline_mode<synchronous>, transform_indices = @transform_8, window_bounds = array<i64: 1, 128>}, {transform_indices = @transform_9, window_bounds = array<i64: 16, 128>}]} {
    %c0 = arith.constant 0 : index
    %c0_0 = arith.constant 0 : index
    %0 = vector.load %arg1[%c0, %c0_0] : memref<16x128xf32, #tpu.memory_space<vmem>>, vector<16x128xf32>
    %c0_1 = arith.constant 0 : index
    %c0_2 = arith.constant 0 : index
    %1 = vector.load %arg2[%c0_1, %c0_2] : memref<1x128xf32, #tpu.memory_space<vmem>>, vector<1x128xf32>
    %c0_3 = arith.constant 0 : index
    %c0_4 = arith.constant 0 : index
    %2 = vector.load %arg3[%c0_3, %c0_4] : memref<1x128xf32, #tpu.memory_space<vmem>>, vector<1x128xf32>
    %c0_5 = arith.constant 0 : index
    %c0_6 = arith.constant 0 : index
    %3 = vector.load %arg5[%c0_5, %c0_6] : memref<1x128xf32, #tpu.memory_space<vmem>>, vector<1x128xf32>
    %c0_7 = arith.constant 0 : index
    %c0_8 = arith.constant 0 : index
    %4 = vector.load %arg6[%c0_7, %c0_8] : memref<1x128xf32, #tpu.memory_space<vmem>>, vector<1x128xf32>
    %c0_9 = arith.constant 0 : index
    %c0_10 = arith.constant 0 : index
    %5 = vector.load %arg7[%c0_9, %c0_10] : memref<1x128xf32, #tpu.memory_space<vmem>>, vector<1x128xf32>
    %c0_11 = arith.constant 0 : index
    %c0_12 = arith.constant 0 : index
    %6 = vector.load %arg9[%c0_11, %c0_12] : memref<1x128xf32, #tpu.memory_space<vmem>>, vector<1x128xf32>
    %7 = tpu.iota {dimensions = array<i32: 1>} : vector<16x128xi32>
    %c32_i32 = arith.constant 32 : i32
    %8 = vector.broadcast %c32_i32 : i32 to vector<16x128xi32>
    %9 = arith.cmpi slt, %7, %8 : vector<16x128xi32>
    %cst = arith.constant dense<0.000000e+00> : vector<16xf32>
    %10 = vector.multi_reduction <add>, %0, %cst [1] : vector<16x128xf32> to vector<16xf32>
    %11 = vector.shape_cast %10 : vector<16xf32> to vector<16x1xf32>
    %cst_13 = arith.constant 3.125000e-02 : f32
    %12 = vector.broadcast %cst_13 : f32 to vector<16x1xf32>
    %13 = arith.mulf %11, %12 : vector<16x1xf32>
    %14 = vector.broadcast %13 : vector<16x1xf32> to vector<16x128xf32>
    %15 = arith.subf %0, %14 : vector<16x128xf32>
    %cst_14 = arith.constant 0.000000e+00 : f32
    %16 = vector.broadcast %cst_14 : f32 to vector<16x128xf32>
    %17 = arith.select %9, %15, %16 : vector<16x128xi1>, vector<16x128xf32>
    %18 = arith.mulf %17, %17 : vector<16x128xf32>
    %cst_15 = arith.constant dense<0.000000e+00> : vector<16xf32>
    %19 = vector.multi_reduction <add>, %18, %cst_15 [1] : vector<16x128xf32> to vector<16xf32>
    %20 = vector.shape_cast %19 : vector<16xf32> to vector<16x1xf32>
    %cst_16 = arith.constant 3.125000e-02 : f32
    %21 = vector.broadcast %cst_16 : f32 to vector<16x1xf32>
    %22 = arith.mulf %20, %21 : vector<16x1xf32>
    %cst_17 = arith.constant 9.99999974E-6 : f32
    %23 = vector.broadcast %cst_17 : f32 to vector<16x1xf32>
    %24 = arith.addf %22, %23 : vector<16x1xf32>
    %25 = math.rsqrt %24 : vector<16x1xf32>
    %26 = vector.broadcast %25 : vector<16x1xf32> to vector<16x128xf32>
    %27 = arith.mulf %17, %26 : vector<16x128xf32>
    %28 = vector.broadcast %1 : vector<1x128xf32> to vector<16x128xf32>
    %29 = arith.mulf %27, %28 : vector<16x128xf32>
    %30 = vector.broadcast %2 : vector<1x128xf32> to vector<16x128xf32>
    %31 = arith.addf %29, %30 : vector<16x128xf32>
    %32 = arith.truncf %31 : vector<16x128xf32> to vector<16x128xbf16>
    %c0_18 = arith.constant 0 : index
    %c0_19 = arith.constant 0 : index
    %33 = vector.load %arg4[%c0_18, %c0_19] : memref<128x128xbf16, #tpu.memory_space<vmem>>, vector<128x128xbf16>
    %cst_20 = arith.constant dense<0.000000e+00> : vector<16x128xf32>
    %34 = tpu.matmul %32, %33, %cst_20 {dimension_numbers = #tpu.dot_dimension_numbers<[1], [0], [0], [1], [0, 0, 1, 1], [], []>} : vector<16x128xbf16>, vector<128x128xbf16>, vector<16x128xf32> -> vector<16x128xf32>
    %35 = vector.broadcast %3 : vector<1x128xf32> to vector<16x128xf32>
    %36 = arith.addf %34, %35 : vector<16x128xf32>
    %cst_21 = arith.constant 5.000000e-01 : f32
    %37 = vector.broadcast %cst_21 : f32 to vector<16x128xf32>
    %38 = arith.mulf %37, %36 : vector<16x128xf32>
    %cst_22 = arith.constant 4.471500e-02 : f32
    %39 = vector.broadcast %cst_22 : f32 to vector<16x128xf32>
    %40 = arith.mulf %39, %36 : vector<16x128xf32>
    %41 = arith.mulf %40, %36 : vector<16x128xf32>
    %42 = arith.mulf %41, %36 : vector<16x128xf32>
    %43 = arith.addf %36, %42 : vector<16x128xf32>
    %cst_23 = arith.constant 0.797884583 : f32
    %44 = vector.broadcast %cst_23 : f32 to vector<16x128xf32>
    %45 = arith.mulf %44, %43 : vector<16x128xf32>
    %46 = math.tanh %45 : vector<16x128xf32>
    %cst_24 = arith.constant 1.000000e+00 : f32
    %47 = vector.broadcast %cst_24 : f32 to vector<16x128xf32>
    %48 = arith.addf %47, %46 : vector<16x128xf32>
    %49 = arith.mulf %38, %48 : vector<16x128xf32>
    %50 = arith.addf %0, %49 : vector<16x128xf32>
    %cst_25 = arith.constant dense<0.000000e+00> : vector<16xf32>
    %51 = vector.multi_reduction <add>, %50, %cst_25 [1] : vector<16x128xf32> to vector<16xf32>
    %52 = vector.shape_cast %51 : vector<16xf32> to vector<16x1xf32>
    %cst_26 = arith.constant 3.125000e-02 : f32
    %53 = vector.broadcast %cst_26 : f32 to vector<16x1xf32>
    %54 = arith.mulf %52, %53 : vector<16x1xf32>
    %55 = vector.broadcast %54 : vector<16x1xf32> to vector<16x128xf32>
    %56 = arith.subf %50, %55 : vector<16x128xf32>
    %cst_27 = arith.constant 0.000000e+00 : f32
    %57 = vector.broadcast %cst_27 : f32 to vector<16x128xf32>
    %58 = arith.select %9, %56, %57 : vector<16x128xi1>, vector<16x128xf32>
    %59 = arith.mulf %58, %58 : vector<16x128xf32>
    %cst_28 = arith.constant dense<0.000000e+00> : vector<16xf32>
    %60 = vector.multi_reduction <add>, %59, %cst_28 [1] : vector<16x128xf32> to vector<16xf32>
    %61 = vector.shape_cast %60 : vector<16xf32> to vector<16x1xf32>
    %cst_29 = arith.constant 3.125000e-02 : f32
    %62 = vector.broadcast %cst_29 : f32 to vector<16x1xf32>
    %63 = arith.mulf %61, %62 : vector<16x1xf32>
    %cst_30 = arith.constant 9.99999974E-6 : f32
    %64 = vector.broadcast %cst_30 : f32 to vector<16x1xf32>
    %65 = arith.addf %63, %64 : vector<16x1xf32>
    %66 = math.rsqrt %65 : vector<16x1xf32>
    %67 = vector.broadcast %66 : vector<16x1xf32> to vector<16x128xf32>
    %68 = arith.mulf %58, %67 : vector<16x128xf32>
    %69 = vector.broadcast %4 : vector<1x128xf32> to vector<16x128xf32>
    %70 = arith.mulf %68, %69 : vector<16x128xf32>
    %71 = vector.broadcast %5 : vector<1x128xf32> to vector<16x128xf32>
    %72 = arith.addf %70, %71 : vector<16x128xf32>
    %73 = arith.truncf %72 : vector<16x128xf32> to vector<16x128xbf16>
    %c0_31 = arith.constant 0 : index
    %c0_32 = arith.constant 0 : index
    %74 = vector.load %arg8[%c0_31, %c0_32] : memref<128x128xbf16, #tpu.memory_space<vmem>>, vector<128x128xbf16>
    %cst_33 = arith.constant dense<0.000000e+00> : vector<16x128xf32>
    %75 = tpu.matmul %73, %74, %cst_33 {dimension_numbers = #tpu.dot_dimension_numbers<[1], [0], [0], [1], [0, 0, 1, 1], [], []>} : vector<16x128xbf16>, vector<128x128xbf16>, vector<16x128xf32> -> vector<16x128xf32>
    %76 = vector.broadcast %6 : vector<1x128xf32> to vector<16x128xf32>
    %77 = arith.addf %75, %76 : vector<16x128xf32>
    %c0_34 = arith.constant 0 : index
    %c0_35 = arith.constant 0 : index
    %78 = vector.load %arg10[%c0_34, %c0_35] : memref<16x128xf32, #tpu.memory_space<vmem>>, vector<16x128xf32>
    tpu.vector_store %arg10[%c0_34, %c0_35], %77 {strides = array<i32>} : memref<16x128xf32, #tpu.memory_space<vmem>>, vector<16x128xf32>,
    return
  }
  func.func @transform_0(%arg0: i32) -> (i32, i32) {
    %c0_i32 = arith.constant 0 : i32
    %c0_i32_0 = arith.constant 0 : i32
    return %arg0, %c0_i32 : i32, i32
  }
  func.func @transform_1(%arg0: i32) -> (i32, i32) {
    %c0_i32 = arith.constant 0 : i32
    %c0_i32_0 = arith.constant 0 : i32
    %c0_i32_1 = arith.constant 0 : i32
    return %c0_i32, %c0_i32_0 : i32, i32
  }
  func.func @transform_2(%arg0: i32) -> (i32, i32) {
    %c0_i32 = arith.constant 0 : i32
    %c0_i32_0 = arith.constant 0 : i32
    %c0_i32_1 = arith.constant 0 : i32
    return %c0_i32, %c0_i32_0 : i32, i32
  }
  func.func @transform_3(%arg0: i32) -> (i32, i32) {
    %c0_i32 = arith.constant 0 : i32
    %c0_i32_0 = arith.constant 0 : i32
    %c0_i32_1 = arith.constant 0 : i32
    return %c0_i32, %c0_i32_0 : i32, i32
  }
  func.func @transform_4(%arg0: i32) -> (i32, i32) {
    %c0_i32 = arith.constant 0 : i32
    %c0_i32_0 = arith.constant 0 : i32
    %c0_i32_1 = arith.constant 0 : i32
    return %c0_i32, %c0_i32_0 : i32, i32
  }
  func.func @transform_5(%arg0: i32) -> (i32, i32) {
    %c0_i32 = arith.constant 0 : i32
    %c0_i32_0 = arith.constant 0 : i32
    %c0_i32_1 = arith.constant 0 : i32
    return %c0_i32, %c0_i32_0 : i32, i32
  }
  func.func @transform_6(%arg0: i32) -> (i32, i32) {
    %c0_i32 = arith.constant 0 : i32
    %c0_i32_0 = arith.constant 0 : i32
    %c0_i32_1 = arith.constant 0 : i32
    return %c0_i32, %c0_i32_0 : i32, i32
  }
  func.func @transform_7(%arg0: i32) -> (i32, i32) {
    %c0_i32 = arith.constant 0 : i32
    %c0_i32_0 = arith.constant 0 : i32
    %c0_i32_1 = arith.constant 0 : i32
    return %c0_i32, %c0_i32_0 : i32, i32
  }
  func.func @transform_8(%arg0: i32) -> (i32, i32) {
    %c0_i32 = arith.constant 0 : i32
    %c0_i32_0 = arith.constant 0 : i32
    %c0_i32_1 = arith.constant 0 : i32
    return %c0_i32, %c0_i32_0 : i32, i32
  }
  func.func @transform_9(%arg0: i32) -> (i32, i32) {
    %c0_i32 = arith.constant 0 : i32
    %c0_i32_0 = arith.constant 0 : i32
    return %arg0, %c0_i32 : i32, i32
  }
}

</mosaic_0001>

<bundles_post_ra>
// kernel: tpu_custom_call.1
= control target key start
LH: loop header
LB: loop body
LE: loop exit
PB: predicated region body
PF: predicated region fallthrough
CT: control target
= control target key end

     0   :  { %14 = vsyncpa [#allocation3], 0  ;;  %s1109_s0 = inlined_call_operand.hbm [shape: f32[16,128], index: 0, kind: input, shape index: {}]   ;;  %s1110_s1 = inlined_call_operand.hbm [shape: f32[1,128], index: 1, kind: input, shape index: {}]   ;;  %s1111_s2 = inlined_call_operand.hbm [shape: f32[1,128], index: 2, kind: input, shape index: {}]   ;;  %s1112_s3 = inlined_call_operand.hbm [shape: bf16[128,128], index: 3, kind: input, shape index: {}]   ;;  %s1113_s4 = inlined_call_operand.hbm [shape: f32[1,128], index: 4, kind: input, shape index: {}]   ;;  %s1114_s5 = inlined_call_operand.hbm [shape: f32[1,128], index: 5, kind: input, shape index: {}]   ;;  %s1115_s6 = inlined_call_operand.hbm [shape: f32[1,128], index: 6, kind: input, shape index: {}]   ;;  %s1116_s7 = inlined_call_operand.hbm [shape: bf16[128,128], index: 7, kind: input, shape index: {}]   ;;  %s1117_s8 = inlined_call_operand.hbm [shape: f32[1,128], index: 8, kind: input, shape index: {}]   ;;  %s1118_s9 = inlined_call_operand.hbm [shape: f32[16,128], index: 9, kind: output, shape index: {}]  }
   0x1   :  { %15 = vsyncpa [#allocation6], 0 }
   0x2   :  { %16 = vsyncpa [#allocation9], 0 }
   0x3   :  { %17 = vsyncpa [#allocation12], 0 }
   0x4   :  { %18 = vsyncpa [#allocation15], 0 }
   0x5   :  { %19 = vsyncpa [#allocation4], 0  ;;  %s858_s30 = smov [#allocation5]   ;;  %s859_s11 = smov [#allocation8]  }
   0x6   :  { %s38_s10 = sshll.u32 %s858_s30, 4  ;;  %s57_s12 = sshll.u32 %s859_s11, 4  ;;  %s39_s10 = int_to_ptr.vmem [resolvable:$true] %s38_s10  ;;  %s924_s12 = int_to_ptr.vmem [resolvable:$true] %s57_s12 }
   0x7   :  { %s626_s15 = scalar_lea.hbm %s1110_s1, 16 }
   0x8   :  { %p627_p0 = scmp.ne.s32.totalorder %s1110_s1, %s626_s15  ;;  %p630_p1 = scmp.lt.u32.totalorder %s626_s15, %s1110_s1 }
   0xa   :  { %p632_p2 = pnand %p630_p1, %p627_p0 }
   0xc   :  { %635 = shalt.err (!%p632_p2)
}
   0xd   :  { %s636_s20 = scalar_lea.vmem %s39_s10, 16  ;;  %s640_s21 = scalar_lea.vmem %s39_s10, 32 }
   0xe   :  { %p637_p3 = scmp.ne.s32.totalorder %s39_s10, %s636_s20  ;;  %p641_p4 = scmp.lt.s32.totalorder %s39_s10, %s39_s10 }
   0xf   :  { %p642_p5 = scmp.lt.s32.totalorder %s640_s21, %s636_s20 }
  0x11   :  { %p643_p6 = por %p642_p5, %p641_p4 }
  0x13   :  { %p644_p7 = pnand %p643_p6, %p637_p3 }
  0x15   :  { %647 = shalt.err (!%p644_p7)
}
  0x16   :  { %41 = dma.hbm_to_vmem [thread:$0]  %s1110_s1, 16, %s39_s10, [#allocation6]  }
  0x17   :  { %s648_s26 = scalar_lea.hbm %s1112_s3, 1024 }
  0x18   :  { %p649_p8 = scmp.ne.s32.totalorder %s1112_s3, %s648_s26  ;;  %p652_p9 = scmp.lt.u32.totalorder %s648_s26, %s1112_s3 }
  0x1a   :  { %p654_p10 = pnand %p652_p9, %p649_p8 }
  0x1c   :  { %657 = shalt.err (!%p654_p10)
}
  0x1d   :  { %s658_s11 = scalar_lea.vmem %s924_s12, 1024  ;;  %p663_p12 = scmp.lt.s32.totalorder %s924_s12, %s924_s12 }
  0x1e   :  { %p659_p11 = scmp.ne.s32.totalorder %s924_s12, %s658_s11  ;;  %p664_p13 = scmp.lt.s32.totalorder %s658_s11, %s658_s11 }
  0x20   :  { %p665_p0 = por %p664_p13, %p663_p12 }
  0x22   :  { %p666_p1 = pnand %p665_p0, %p659_p11 }
  0x24   :  { %669 = shalt.err (!%p666_p1)
}
  0x25   :  { %s860_s1 = smov 64   ;;  %s861_s10 = smov 4  }
  0x26   :  { %63 = dma.hbm_to_vmem [thread:$0]  %s1112_s3, 1024, %s924_s12, [#allocation9], %s860_s1, %s860_s1, %s861_s10  }
  0x27   :  { %s862_s15 = smov [#allocation11]   ;;  %s863_s17 = smov [#allocation14]  }
  0x28   :  { %s80_s16 = sshll.u32 %s862_s15, 4  ;;  %s99_s18 = sshll.u32 %s863_s17, 4  ;;  %s81_s16 = int_to_ptr.vmem [resolvable:$true] %s80_s16  ;;  %s958_s18 = int_to_ptr.vmem [resolvable:$true] %s99_s18 }
  0x29   :  { %s670_s21 = scalar_lea.hbm %s1114_s5, 16 }
  0x2a   :  { %p671_p2 = scmp.ne.s32.totalorder %s1114_s5, %s670_s21  ;;  %p674_p3 = scmp.lt.u32.totalorder %s670_s21, %s1114_s5 }
  0x2c   :  { %p676_p4 = pnand %p674_p3, %p671_p2 }
  0x2e   :  { %679 = shalt.err (!%p676_p4)
}
  0x2f   :  { %s680_s3 = scalar_lea.vmem %s81_s16, 16  ;;  %s684_s12 = scalar_lea.vmem %s81_s16, 32 }
  0x30   :  { %p681_p5 = scmp.ne.s32.totalorder %s81_s16, %s680_s3  ;;  %p685_p6 = scmp.lt.s32.totalorder %s81_s16, %s81_s16 }
  0x31   :  { %p686_p7 = scmp.lt.s32.totalorder %s684_s12, %s680_s3 }
  0x33   :  { %p687_p8 = por %p686_p7, %p685_p6 }
  0x35   :  { %p688_p9 = pnand %p687_p8, %p681_p5 }
  0x37   :  { %691 = shalt.err (!%p688_p9)
}
  0x38   :  { %83 = dma.hbm_to_vmem [thread:$0]  %s1114_s5, 16, %s81_s16, [#allocation12]  }
  0x39   :  { %s692_s30 = scalar_lea.hbm %s1116_s7, 1024 }
  0x3a   :  { %p693_p10 = scmp.ne.s32.totalorder %s1116_s7, %s692_s30  ;;  %p696_p11 = scmp.lt.u32.totalorder %s692_s30, %s1116_s7 }
  0x3c   :  { %p698_p12 = pnand %p696_p11, %p693_p10 }
  0x3e   :  { %701 = shalt.err (!%p698_p12)
}
  0x3f   :  { %s702_s17 = scalar_lea.vmem %s958_s18, 1024  ;;  %p707_p0 = scmp.lt.s32.totalorder %s958_s18, %s958_s18 }
  0x40   :  { %p703_p13 = scmp.ne.s32.totalorder %s958_s18, %s702_s17  ;;  %p708_p1 = scmp.lt.s32.totalorder %s702_s17, %s702_s17 }
  0x42   :  { %p709_p2 = por %p708_p1, %p707_p0 }
  0x44   :  { %p710_p3 = pnand %p709_p2, %p703_p13 }
  0x46   :  { %713 = shalt.err (!%p710_p3)
}
  0x47   :  { %105 = dma.hbm_to_vmem [thread:$0]  %s1116_s7, 1024, %s958_s18, [#allocation15], %s860_s1, %s860_s1, %s861_s10  }
  0x48   :  { %s864_s19 = smov [#allocation2]   ;;  %s714_s23 = scalar_lea.hbm %s1109_s0, 256 }
  0x49   :  { %s25_s20 = sshll.u32 %s864_s19, 4  ;;  %p715_p4 = scmp.ne.s32.totalorder %s1109_s0, %s714_s23  ;;  %s26_s20 = int_to_ptr.vmem [resolvable:$true] %s25_s20 }
  0x4a   :  { %p718_p5 = scmp.lt.u32.totalorder %s714_s23, %s1109_s0 }
  0x4c   :  { %p720_p6 = pnand %p718_p5, %p715_p4 }
  0x4e   :  { %723 = shalt.err (!%p720_p6)
}
  0x4f   :  { %s724_s26 = scalar_lea.vmem %s26_s20, 256  ;;  %p729_p8 = scmp.lt.s32.totalorder %s26_s20, %s26_s20 }
  0x50   :  { %p725_p7 = scmp.ne.s32.totalorder %s26_s20, %s724_s26  ;;  %p730_p9 = scmp.lt.s32.totalorder %s724_s26, %s724_s26 }
  0x52   :  { %p731_p10 = por %p730_p9, %p729_p8 }
  0x54   :  { %p732_p11 = pnand %p731_p10, %p725_p7 }
  0x56   :  { %735 = shalt.err (!%p732_p11)
}
  0x57   :  { %s865_s7 = smov 128   ;;  %s866_s1 = smov 8  }
  0x58   :  { %31 = dma.hbm_to_vmem [thread:$0]  %s1109_s0, 256, %s26_s20, [#allocation3], %s865_s7, %s865_s7, %s866_s1  }
  0x59   :  { %s867_s27 = smov [#allocation7]   ;;  %s868_s29 = smov [#allocation10]  }
  0x5a   :  { %s48_s28 = sshll.u32 %s867_s27, 4  ;;  %s70_s30 = sshll.u32 %s868_s29, 4  ;;  %s49_s28 = int_to_ptr.vmem [resolvable:$true] %s48_s28  ;;  %s71_s30 = int_to_ptr.vmem [resolvable:$true] %s70_s30 }
  0x5b   :  { %s736_s14 = scalar_lea.hbm %s1111_s2, 16 }
  0x5c   :  { %p737_p12 = scmp.ne.s32.totalorder %s1111_s2, %s736_s14  ;;  %p740_p13 = scmp.lt.u32.totalorder %s736_s14, %s1111_s2 }
  0x5e   :  { %p742_p0 = pnand %p740_p13, %p737_p12 }
  0x60   :  { %745 = shalt.err (!%p742_p0)
}
  0x61   :  { %s746_s0 = scalar_lea.vmem %s49_s28, 16  ;;  %s750_s19 = scalar_lea.vmem %s49_s28, 32 }
  0x62   :  { %p747_p1 = scmp.ne.s32.totalorder %s49_s28, %s746_s0  ;;  %p751_p2 = scmp.lt.s32.totalorder %s49_s28, %s49_s28 }
  0x63   :  { %p752_p3 = scmp.lt.s32.totalorder %s750_s19, %s746_s0 }
  0x65   :  { %p753_p4 = por %p752_p3, %p751_p2 }
  0x67   :  { %p754_p5 = pnand %p753_p4, %p747_p1 }
  0x69   :  { %757 = shalt.err (!%p754_p5)
}
  0x6a   :  { %51 = dma.hbm_to_vmem [thread:$0]  %s1111_s2, 16, %s49_s28, [#allocation6]  }
  0x6b   :  { %s758_s24 = scalar_lea.hbm %s1113_s4, 16 }
  0x6c   :  { %p759_p6 = scmp.ne.s32.totalorder %s1113_s4, %s758_s24  ;;  %p762_p7 = scmp.lt.u32.totalorder %s758_s24, %s1113_s4 }
  0x6e   :  { %p764_p8 = pnand %p762_p7, %p759_p6 }
  0x70   :  { %767 = shalt.err (!%p764_p8)
}
  0x71   :  { %s768_s10 = scalar_lea.vmem %s71_s30, 16  ;;  %s772_s18 = scalar_lea.vmem %s71_s30, 32 }
  0x72   :  { %p769_p9 = scmp.ne.s32.totalorder %s71_s30, %s768_s10  ;;  %p773_p10 = scmp.lt.s32.totalorder %s71_s30, %s71_s30 }
  0x73   :  { %p774_p11 = scmp.lt.s32.totalorder %s772_s18, %s768_s10 }
  0x75   :  { %p775_p12 = por %p774_p11, %p773_p10 }
  0x77   :  { %p776_p13 = pnand %p775_p12, %p769_p9 }
  0x79   :  { %779 = shalt.err (!%p776_p13)
}
  0x7a   :  { %73 = dma.hbm_to_vmem [thread:$0]  %s1113_s4, 16, %s71_s30, [#allocation9]  }
  0x7b   :  { %s869_s28 = smov [#allocation13]   ;;  %s870_s11 = smov [#allocation16]  }
  0x7c   :  { %s90_s29 = sshll.u32 %s869_s28, 4  ;;  %s112_s13 = sshll.u32 %s870_s11, 4  ;;  %s91_s29 = int_to_ptr.vmem [resolvable:$true] %s90_s29  ;;  %s113_s13 = int_to_ptr.vmem [resolvable:$true] %s112_s13 }
  0x7d   :  { %s780_s17 = scalar_lea.hbm %s1115_s6, 16 }
  0x7e   :  { %p781_p0 = scmp.ne.s32.totalorder %s1115_s6, %s780_s17  ;;  %p784_p1 = scmp.lt.u32.totalorder %s780_s17, %s1115_s6 }
  0x80   :  { %p786_p2 = pnand %p784_p1, %p781_p0 }
  0x82   :  { %789 = shalt.err (!%p786_p2)
}
  0x83   :  { %s790_s4 = scalar_lea.vmem %s91_s29, 16  ;;  %s794_s30 = scalar_lea.vmem %s91_s29, 32 }
  0x84   :  { %p791_p3 = scmp.ne.s32.totalorder %s91_s29, %s790_s4  ;;  %p795_p4 = scmp.lt.s32.totalorder %s91_s29, %s91_s29 }
  0x85   :  { %p796_p5 = scmp.lt.s32.totalorder %s794_s30, %s790_s4 }
  0x87   :  { %p797_p6 = por %p796_p5, %p795_p4 }
  0x89   :  { %p798_p7 = pnand %p797_p6, %p791_p3 }
  0x8b   :  { %801 = shalt.err (!%p798_p7)
}
  0x8c   :  { %93 = dma.hbm_to_vmem [thread:$0]  %s1115_s6, 16, %s91_s29, [#allocation12]  }
  0x8d   :  { %s802_s24 = scalar_lea.hbm %s1117_s8, 16 }
  0x8e   :  { %p803_p8 = scmp.ne.s32.totalorder %s1117_s8, %s802_s24  ;;  %p806_p9 = scmp.lt.u32.totalorder %s802_s24, %s1117_s8 }
  0x90   :  { %p808_p10 = pnand %p806_p9, %p803_p8 }
  0x92   :  { %811 = shalt.err (!%p808_p10)
}
  0x93   :  { %s812_s10 = scalar_lea.vmem %s113_s13, 16  ;;  %s816_s18 = scalar_lea.vmem %s113_s13, 32 }
  0x94   :  { %p813_p11 = scmp.ne.s32.totalorder %s113_s13, %s812_s10  ;;  %p817_p12 = scmp.lt.s32.totalorder %s113_s13, %s113_s13 }
  0x95   :  { %p818_p13 = scmp.lt.s32.totalorder %s816_s18, %s812_s10 }
  0x97   :  { %p819_p0 = por %p818_p13, %p817_p12 }
  0x99   :  { %p820_p1 = pnand %p819_p0, %p813_p11 }
  0x9b   :  { %823 = shalt.err (!%p820_p1)
}
  0x9c   :  { %115 = dma.hbm_to_vmem [thread:$0]  %s1117_s8, 16, %s113_s13, [#allocation15]  }
  0x9d   :  { %846 = dma.done.wait [#allocation3], 256  }
  0x9e   :  { %847 = vsyncadd [#allocation3], 4294967040 }
  0x9f   :  { %848 = dma.done.wait [#allocation6], 32  }
  0xa0   :  { %849 = vsyncadd [#allocation6], 4294967264 }
  0xa1   :  { %850 = dma.done.wait [#allocation9], 1040  }
  0xa2   :  { %851 = vsyncadd [#allocation9], 4294966256 }
  0xa3   :  { %852 = dma.done.wait [#allocation12], 32  }
  0xa4   :  { %853 = vsyncadd [#allocation12], 4294967264 }
  0xa5   :  { %854 = dma.done.wait [#allocation15], 1040  }
  0xa6   :  { %855 = vsyncadd [#allocation15], 4294966256  ;;  %v1055_v0 = vld [vmem:[#allocation2] sm:$0xff]  ;;  %v1057_v1 = vld [vmem:[#allocation2 + $0x8] sm:$0xff]  ;;  %v871_v3 = vmov 0.0   ;;  %v152_v4 = vlaneseq  ;;  %vm872_vm1 = vmmov 0  }
  0xa7   :  { %155 = vadd.xlane.f32.xlu0 %v1055_v0  ;;  %v598_v2 = vld [vmem:[#allocation8] sm:$0xff]   ;;  %542 = vmatprep.subr.bf16.mxu0 %v871_v3  ;;  %v599_v16 = vld [vmem:[#allocation8 + $0x8] sm:$0xff]   ;;  %v600_v17 = vld [vmem:[#allocation8 + $0x10] sm:$0xff]   ;;  %s873_s8 = smov [#allocation17]  }
  0xa8   :  { %562 = vmatprep.subr.bf16.mxu1 %v871_v3  ;;  %543 = vmatpush3.bf16.msra.mxu0 %v598_v2  ;;  %v1064_v5 = vand.u32 127, %v152_v4  ;;  %v601_v18 = vld [vmem:[#allocation8 + $0x18] sm:$0xff]   ;;  %v602_v19 = vld [vmem:[#allocation8 + $0x20] sm:$0xff]   ;;  %v603_v20 = vld [vmem:[#allocation8 + $0x28] sm:$0xff]   ;;  %s486_s27 = sshll.u32 %s873_s8, 4  ;;  %s487_s27 = int_to_ptr.vmem [resolvable:$true] %s486_s27 }
  0xa9   :  { %544 = vmatprep.subr.bf16.mxu0 %v871_v3  ;;  %558 = vmatprep.mubr.msk.bf16.mxu0 %vm872_vm1, %v871_v3  ;;  %v604_v21 = vld [vmem:[#allocation8 + $0x30] sm:$0xff]   ;;  %v605_v22 = vld [vmem:[#allocation8 + $0x38] sm:$0xff]   ;;  %v504_v40 = vld [vmem:[#allocation10] ss:$0 sm:$0xff]  ;;  %s824_s28 = scalar_lea.vmem %s487_s27, 256  ;;  %p829_p3 = scmp.lt.s32.totalorder %s487_s27, %s487_s27 }
  0xaa   :  { %vm154_vm0 = vcmp.lt.s32.totalorder %v1064_v5, 32  ;;  %578 = vmatprep.mubr.msk.bf16.mxu1 %vm872_vm1, %v871_v3  ;;  %v502_v31 = vld [vmem:[#allocation5] ss:$0 sm:$0xff]  ;;  %v503_v35 = vld [vmem:[#allocation7] ss:$0 sm:$0xff]  ;;  %p825_p2 = scmp.ne.s32.totalorder %s487_s27, %s824_s28  ;;  %p830_p4 = scmp.lt.s32.totalorder %s824_s28, %s824_s28 }
  0xab   :  { %157 = vadd.xlane.f32.xlu0 %v1057_v1  ;;  %v613_v5 = vld [vmem:[#allocation14 + $0x38] sm:$0xff]  }
  0xac   :  { %545 = vmatpush3.bf16.msra.mxu0 %v599_v16  ;;  %p831_p5 = por %p830_p4, %p829_p3 }
  0xad   :  { %546 = vmatprep.subr.bf16.mxu0 %v871_v3 }
  0xae   :  { %p832_p6 = pnand %p831_p5, %p825_p2 }
  0xb0   :  { %547 = vmatpush3.bf16.msra.mxu0 %v600_v17  ;;  %v608_v17 = vld [vmem:[#allocation14 + $0x10] sm:$0xff]  }
  0xb1   :  { %548 = vmatprep.subr.bf16.mxu0 %v871_v3 }
  0xb4   :  { %549 = vmatpush3.bf16.msra.mxu0 %v601_v18  ;;  %v609_v18 = vld [vmem:[#allocation14 + $0x18] sm:$0xff]  }
  0xb5   :  { %550 = vmatprep.subr.bf16.mxu0 %v871_v3 }
  0xb8   :  { %551 = vmatpush3.bf16.msra.mxu0 %v602_v19  ;;  %v610_v19 = vld [vmem:[#allocation14 + $0x20] sm:$0xff]  }
  0xb9   :  { %552 = vmatprep.subr.bf16.mxu0 %v871_v3 }
  0xbc   :  { %553 = vmatpush3.bf16.msra.mxu0 %v603_v20  ;;  %v611_v20 = vld [vmem:[#allocation14 + $0x28] sm:$0xff]  }
  0xbd   :  { %554 = vmatprep.subr.bf16.mxu0 %v871_v3 }
  0xc0   :  { %555 = vmatpush3.bf16.msra.mxu0 %v604_v21  ;;  %v612_v21 = vld [vmem:[#allocation14 + $0x30] sm:$0xff]  }
  0xc1   :  { %556 = vmatprep.subr.bf16.mxu0 %v871_v3 }
  0xc4   :  { %557 = vmatpush3.bf16.msra.mxu0 %v605_v22 }
 0x134   :  { %v156_v6 = vpop.xlane.xlu0 %155 }
 0x135   :  { %v159_v7 = vmul.f32 0.03125, %v156_v6 }
 0x137   :  { %v161_v8 = vsub.f32 %v1055_v0, %v159_v7  ;;  %v606_v7 = vld [vmem:[#allocation14] sm:$0xff]  }
 0x138   :  { %v158_v9 = vpop.xlane.xlu0 %157  ;;  %563 = vmatpush3.bf16.msra.mxu1 %v606_v7 }
 0x139   :  { %v160_v10 = vmul.f32 0.03125, %v158_v9  ;;  %v163_v11 = vsel %vm154_vm0, %v161_v8, 0.0  ;;  %v607_v8 = vld [vmem:[#allocation14 + $0x8] sm:$0xff]   ;;  %564 = vmatprep.subr.bf16.mxu1 %v871_v3 }
 0x13a   :  { %v165_v12 = vmul.f32 %v163_v11, %v163_v11 }
 0x13b   :  { %v162_v13 = vsub.f32 %v1057_v1, %v160_v10 }
 0x13c   :  { %167 = vadd.xlane.f32.xlu1 %v165_v12  ;;  %565 = vmatpush3.bf16.msra.mxu1 %v607_v8 }
 0x13d   :  { %v164_v14 = vsel %vm154_vm0, %v162_v13, 0.0  ;;  %566 = vmatprep.subr.bf16.mxu1 %v871_v3 }
 0x13e   :  { %v166_v15 = vmul.f32 %v164_v14, %v164_v14 }
 0x140   :  { %169 = vadd.xlane.f32.xlu1 %v166_v15  ;;  %567 = vmatpush3.bf16.msra.mxu1 %v608_v17 }
 0x141   :  { %568 = vmatprep.subr.bf16.mxu1 %v871_v3 }
 0x144   :  { %569 = vmatpush3.bf16.msra.mxu1 %v609_v18 }
 0x145   :  { %570 = vmatprep.subr.bf16.mxu1 %v871_v3 }
 0x148   :  { %571 = vmatpush3.bf16.msra.mxu1 %v610_v19 }
 0x149   :  { %572 = vmatprep.subr.bf16.mxu1 %v871_v3 }
 0x14c   :  { %573 = vmatpush3.bf16.msra.mxu1 %v611_v20 }
 0x14d   :  { %574 = vmatprep.subr.bf16.mxu1 %v871_v3 }
 0x150   :  { %575 = vmatpush3.bf16.msra.mxu1 %v612_v21 }
 0x151   :  { %576 = vmatprep.subr.bf16.mxu1 %v871_v3 }
 0x154   :  { %577 = vmatpush3.bf16.msra.mxu1 %v613_v5 }
 0x1c9   :  { %v168_v23 = vpop.xlane.xlu1 %167 }
 0x1ca   :  { %v171_v24 = vmul.f32 0.03125, %v168_v23 }
 0x1cc   :  { %v173_v25 = vadd.f32 1e-05, %v171_v24 }
 0x1cd   :  { %v170_v26 = vpop.xlane.xlu1 %169 }
 0x1ce   :  { %614 = vrsqrt.f32 %v173_v25  ;;  %v172_v27 = vmul.f32 0.03125, %v170_v26 }
 0x1d0   :  { %v174_v28 = vadd.f32 1e-05, %v172_v27 }
 0x1d2   :  { %616 = vrsqrt.f32 %v174_v28 }
 0x1d8   :  { %v615_v29 = vpop.eup %614 }
 0x1d9   :  { %v177_v30 = vmul.f32 %v615_v29, %v163_v11  ;;  %v513_v29 = vld [vmem:[#allocation11] ss:$0 sm:$0xff] }
 0x1db   :  { %v185_v34 = vmul.f32 %v502_v31, %v177_v30 }
 0x1dc   :  { %v617_v32 = vpop.eup %616 }
 0x1dd   :  { %v178_v33 = vmul.f32 %v617_v32, %v164_v14  ;;  %v193_v37 = vadd.f32 %v503_v35, %v185_v34  ;;  %v514_v34 = vld [vmem:[#allocation13] ss:$0 sm:$0xff] }
 0x1df   :  { %v186_v36 = vmul.f32 %v502_v31, %v178_v33 }
 0x1e1   :  { %v194_v38 = vadd.f32 %v503_v35, %v186_v36 }
 0x1e3   :  { %v195_v39 = vpack.c.bf16 %v194_v38, %v193_v37  ;;  %v515_v38 = vld [vmem:[#allocation16] ss:$0 sm:$0xff] }
 0x1e5   :  { %559 = vmatmul.mubr.bf16.vlgmr.msra.gmra.mrb[0].mxu0 %v195_v39 }
 0x2b8   :  { %v300_v41 = vpop.f32.mrb[0].mxu0 }
 0x2b9   :  { %v301_v42 = vadd.f32 %v504_v40, %v300_v41  ;;  %v560_v43 = vpop.f32.mrb[1].mxu0 }
 0x2ba   :  { %v303_v44 = vpop.f32.mrb[2].mxu0 }
 0x2bb   :  { %v309_v45 = vmul.f32 0.044715, %v301_v42  ;;  %v304_v46 = vadd.f32 %v504_v40, %v303_v44  ;;  %v561_v47 = vpop.f32.mrb[3].mxu0  ;;  %v307_v58 = vmul.f32 0.5, %v301_v42 }
 0x2bd   :  { %v311_v48 = vmul.f32 %v309_v45, %v301_v42  ;;  %v310_v49 = vmul.f32 0.044715, %v304_v46  ;;  %v308_v62 = vmul.f32 0.5, %v304_v46 }
 0x2bf   :  { %v312_v50 = vmul.f32 %v310_v49, %v304_v46  ;;  %v313_v51 = vmul.f32 %v311_v48, %v301_v42 }
 0x2c1   :  { %v315_v52 = vadd.f32 %v313_v51, %v301_v42  ;;  %v314_v53 = vmul.f32 %v312_v50, %v304_v46 }
 0x2c3   :  { %v317_v54 = vmul.f32 0.7978846, %v315_v52  ;;  %v316_v55 = vadd.f32 %v314_v53, %v304_v46 }
 0x2c5   :  { %618 = vtanh.f32 %v317_v54  ;;  %v318_v56 = vmul.f32 0.7978846, %v316_v55 }
 0x2c7   :  { %620 = vtanh.f32 %v318_v56 }
 0x2cf   :  { %v619_v57 = vpop.eup %618 }
 0x2d0   :  { %v321_v59 = vadd.f32 1.0, %v619_v57 }
 0x2d1   :  { %v621_v60 = vpop.eup %620 }
 0x2d2   :  { %v323_v61 = vmul.f32 %v321_v59, %v307_v58  ;;  %v322_v63 = vadd.f32 1.0, %v621_v60 }
 0x2d4   :  { %v325_v2 = vadd.f32 %v323_v61, %v1055_v0  ;;  %v324_v4 = vmul.f32 %v322_v63, %v308_v62 }
 0x2d6   :  { %327 = vadd.xlane.f32.xlu0 %v325_v2  ;;  %v326_v6 = vadd.f32 %v324_v4, %v1057_v1 }
 0x2d8   :  { %329 = vadd.xlane.f32.xlu1 %v326_v6 }
 0x363   :  { %v328_v9 = vpop.xlane.xlu0 %327 }
 0x364   :  { %v331_v10 = vmul.f32 0.03125, %v328_v9 }
 0x365   :  { %v330_v11 = vpop.xlane.xlu1 %329 }
 0x366   :  { %v333_v12 = vsub.f32 %v325_v2, %v331_v10  ;;  %v332_v13 = vmul.f32 0.03125, %v330_v11 }
 0x368   :  { %v334_v14 = vsub.f32 %v326_v6, %v332_v13  ;;  %v335_v0 = vsel %vm154_vm0, %v333_v12, 0.0 }
 0x369   :  { %v337_v15 = vmul.f32 %v335_v0, %v335_v0 }
 0x36a   :  { %v336_v1 = vsel %vm154_vm0, %v334_v14, 0.0 }
 0x36b   :  { %339 = vadd.xlane.f32.xlu0 %v337_v15  ;;  %v338_v16 = vmul.f32 %v336_v1, %v336_v1 }
 0x36d   :  { %341 = vadd.xlane.f32.xlu1 %v338_v16 }
 0x3f8   :  { %v340_v22 = vpop.xlane.xlu0 %339 }
 0x3f9   :  { %v343_v23 = vmul.f32 0.03125, %v340_v22 }
 0x3fa   :  { %v342_v24 = vpop.xlane.xlu1 %341 }
 0x3fb   :  { %v345_v25 = vadd.f32 1e-05, %v343_v23  ;;  %v344_v26 = vmul.f32 0.03125, %v342_v24 }
 0x3fd   :  { %622 = vrsqrt.f32 %v345_v25  ;;  %v346_v27 = vadd.f32 1e-05, %v344_v26 }
 0x3ff   :  { %624 = vrsqrt.f32 %v346_v27 }
 0x407   :  { %v623_v28 = vpop.eup %622 }
 0x408   :  { %v349_v30 = vmul.f32 %v623_v28, %v335_v0 }
 0x409   :  { %v625_v31 = vpop.eup %624 }
 0x40a   :  { %v350_v32 = vmul.f32 %v625_v31, %v336_v1  ;;  %v357_v33 = vmul.f32 %v513_v29, %v349_v30 }
 0x40c   :  { %v358_v35 = vmul.f32 %v513_v29, %v350_v32  ;;  %v365_v36 = vadd.f32 %v514_v34, %v357_v33 }
 0x40e   :  { %v366_v37 = vadd.f32 %v514_v34, %v358_v35 }
 0x410   :  { %v367_v3 = vpack.c.bf16 %v366_v37, %v365_v36 }
 0x412   :  { %579 = vmatmul.mubr.bf16.vlgmr.msra.gmra.mrb[0].mxu1 %v367_v3 }
 0x4e5   :  { %v472_v39 = vpop.f32.mrb[0].mxu1 }
 0x4e6   :  { %v473_v40 = vadd.f32 %v515_v38, %v472_v39  ;;  %v580_v41 = vpop.f32.mrb[1].mxu1 }
 0x4e7   :  { %v475_v42 = vpop.f32.mrb[2].mxu1 }
 0x4e8   :  { %479 = vst [vmem:[#allocation17] sm:$0xff] %v473_v40  ;;  %v476_v43 = vadd.f32 %v515_v38, %v475_v42  ;;  %v581_v44 = vpop.f32.mrb[3].mxu1 }
 0x4ea   :  { %480 = vst [vmem:[#allocation17 + $0x8] sm:$0xff] %v476_v43 }
 0x4eb   :  { %835 = shalt.err (!%p832_p6)
}
 0x4ec   :  { %s836_s13 = scalar_lea.hbm %s1118_s9, 256 }
 0x4ed   :  { %p837_p7 = scmp.ne.s32.totalorder %s1118_s9, %s836_s13  ;;  %p840_p8 = scmp.lt.u32.totalorder %s836_s13, %s1118_s9 }
 0x4ef   :  { %p842_p9 = pnand %p840_p8, %p837_p7 }
 0x4f1   :  { %845 = shalt.err (!%p842_p9)
}
 0x4f2   :  { %492 = dma.vmem_to_hbm [thread:$0]  %s487_s27, 256, %s1118_s9, [#allocation4], %s865_s7, %s865_s7, %s866_s1  }
 0x4f3   :  { %856 = dma.done.wait [#allocation4], 256  }
 0x4f4   :  { %857 = vsyncadd [#allocation4], 4294967040 }
 0x4f5   :  { %496 = vsyncpa [#allocation3], 1 }
 0x4f6   :  { %497 = vsyncpa [#allocation6], 1 }
 0x4f7   :  { %498 = vsyncpa [#allocation9], 1 }
 0x4f8   :  { %499 = vsyncpa [#allocation12], 1 }
 0x4f9   :  { %500 = vsyncpa [#allocation15], 1 }
 0x4fa   :  { %501 = vsyncpa [#allocation4], 1 }

// kernel: tpu_custom_call.1
= control target key start
LH: loop header
LB: loop body
LE: loop exit
PB: predicated region body
PF: predicated region fallthrough
CT: control target
= control target key end

     0   :  { %14 = vsyncpa [#allocation3], 0  ;;  %s1109_s0 = inlined_call_operand.hbm [shape: f32[16,128], index: 0, kind: input, shape index: {}]   ;;  %s1110_s1 = inlined_call_operand.hbm [shape: f32[1,128], index: 1, kind: input, shape index: {}]   ;;  %s1111_s2 = inlined_call_operand.hbm [shape: f32[1,128], index: 2, kind: input, shape index: {}]   ;;  %s1112_s3 = inlined_call_operand.hbm [shape: bf16[128,128], index: 3, kind: input, shape index: {}]   ;;  %s1113_s4 = inlined_call_operand.hbm [shape: f32[1,128], index: 4, kind: input, shape index: {}]   ;;  %s1114_s5 = inlined_call_operand.hbm [shape: f32[1,128], index: 5, kind: input, shape index: {}]   ;;  %s1115_s6 = inlined_call_operand.hbm [shape: f32[1,128], index: 6, kind: input, shape index: {}]   ;;  %s1116_s7 = inlined_call_operand.hbm [shape: bf16[128,128], index: 7, kind: input, shape index: {}]   ;;  %s1117_s8 = inlined_call_operand.hbm [shape: f32[1,128], index: 8, kind: input, shape index: {}]   ;;  %s1118_s9 = inlined_call_operand.hbm [shape: f32[16,128], index: 9, kind: output, shape index: {}]  }
   0x1   :  { %15 = vsyncpa [#allocation6], 0 }
   0x2   :  { %16 = vsyncpa [#allocation9], 0 }
   0x3   :  { %17 = vsyncpa [#allocation12], 0 }
   0x4   :  { %18 = vsyncpa [#allocation15], 0 }
   0x5   :  { %19 = vsyncpa [#allocation4], 0  ;;  %s858_s30 = smov [#allocation5]   ;;  %s859_s11 = smov [#allocation8]  }
   0x6   :  { %s38_s10 = sshll.u32 %s858_s30, 4  ;;  %s57_s12 = sshll.u32 %s859_s11, 4  ;;  %s39_s10 = int_to_ptr.vmem [resolvable:$true] %s38_s10  ;;  %s924_s12 = int_to_ptr.vmem [resolvable:$true] %s57_s12 }
   0x7   :  { %s626_s15 = scalar_lea.hbm %s1110_s1, 16 }
   0x8   :  { %p627_p0 = scmp.ne.s32.totalorder %s1110_s1, %s626_s15  ;;  %p630_p1 = scmp.lt.u32.totalorder %s626_s15, %s1110_s1 }
   0xa   :  { %p632_p2 = pnand %p630_p1, %p627_p0 }
   0xc   :  { %635 = shalt.err (!%p632_p2)
}
   0xd   :  { %s636_s20 = scalar_lea.vmem %s39_s10, 16  ;;  %s640_s21 = scalar_lea.vmem %s39_s10, 32 }
   0xe   :  { %p637_p3 = scmp.ne.s32.totalorder %s39_s10, %s636_s20  ;;  %p641_p4 = scmp.lt.s32.totalorder %s39_s10, %s39_s10 }
   0xf   :  { %p642_p5 = scmp.lt.s32.totalorder %s640_s21, %s636_s20 }
  0x11   :  { %p643_p6 = por %p642_p5, %p641_p4 }
  0x13   :  { %p644_p7 = pnand %p643_p6, %p637_p3 }
  0x15   :  { %647 = shalt.err (!%p644_p7)
}
  0x16   :  { %41 = dma.hbm_to_vmem [thread:$0]  %s1110_s1, 16, %s39_s10, [#allocation6]  }
  0x17   :  { %s648_s26 = scalar_lea.hbm %s1112_s3, 1024 }
  0x18   :  { %p649_p8 = scmp.ne.s32.totalorder %s1112_s3, %s648_s26  ;;  %p652_p9 = scmp.lt.u32.totalorder %s648_s26, %s1112_s3 }
  0x1a   :  { %p654_p10 = pnand %p652_p9, %p649_p8 }
  0x1c   :  { %657 = shalt.err (!%p654_p10)
}
  0x1d   :  { %s658_s11 = scalar_lea.vmem %s924_s12, 1024  ;;  %p663_p12 = scmp.lt.s32.totalorder %s924_s12, %s924_s12 }
  0x1e   :  { %p659_p11 = scmp.ne.s32.totalorder %s924_s12, %s658_s11  ;;  %p664_p13 = scmp.lt.s32.totalorder %s658_s11, %s658_s11 }
  0x20   :  { %p665_p0 = por %p664_p13, %p663_p12 }
  0x22   :  { %p666_p1 = pnand %p665_p0, %p659_p11 }
  0x24   :  { %669 = shalt.err (!%p666_p1)
}
  0x25   :  { %s860_s1 = smov 64   ;;  %s861_s10 = smov 4  }
  0x26   :  { %63 = dma.hbm_to_vmem [thread:$0]  %s1112_s3, 1024, %s924_s12, [#allocation9], %s860_s1, %s860_s1, %s861_s10  }
  0x27   :  { %s862_s15 = smov [#allocation11]   ;;  %s863_s17 = smov [#allocation14]  }
  0x28   :  { %s80_s16 = sshll.u32 %s862_s15, 4  ;;  %s99_s18 = sshll.u32 %s863_s17, 4  ;;  %s81_s16 = int_to_ptr.vmem [resolvable:$true] %s80_s16  ;;  %s958_s18 = int_to_ptr.vmem [resolvable:$true] %s99_s18 }
  0x29   :  { %s670_s21 = scalar_lea.hbm %s1114_s5, 16 }
  0x2a   :  { %p671_p2 = scmp.ne.s32.totalorder %s1114_s5, %s670_s21  ;;  %p674_p3 = scmp.lt.u32.totalorder %s670_s21, %s1114_s5 }
  0x2c   :  { %p676_p4 = pnand %p674_p3, %p671_p2 }
  0x2e   :  { %679 = shalt.err (!%p676_p4)
}
  0x2f   :  { %s680_s3 = scalar_lea.vmem %s81_s16, 16  ;;  %s684_s12 = scalar_lea.vmem %s81_s16, 32 }
  0x30   :  { %p681_p5 = scmp.ne.s32.totalorder %s81_s16, %s680_s3  ;;  %p685_p6 = scmp.lt.s32.totalorder %s81_s16, %s81_s16 }
  0x31   :  { %p686_p7 = scmp.lt.s32.totalorder %s684_s12, %s680_s3 }
  0x33   :  { %p687_p8 = por %p686_p7, %p685_p6 }
  0x35   :  { %p688_p9 = pnand %p687_p8, %p681_p5 }
  0x37   :  { %691 = shalt.err (!%p688_p9)
}
  0x38   :  { %83 = dma.hbm_to_vmem [thread:$0]  %s1114_s5, 16, %s81_s16, [#allocation12]  }
  0x39   :  { %s692_s30 = scalar_lea.hbm %s1116_s7, 1024 }
  0x3a   :  { %p693_p10 = scmp.ne.s32.totalorder %s1116_s7, %s692_s30  ;;  %p696_p11 = scmp.lt.u32.totalorder %s692_s30, %s1116_s7 }
  0x3c   :  { %p698_p12 = pnand %p696_p11, %p693_p10 }
  0x3e   :  { %701 = shalt.err (!%p698_p12)
}
  0x3f   :  { %s702_s17 = scalar_lea.vmem %s958_s18, 1024  ;;  %p707_p0 = scmp.lt.s32.totalorder %s958_s18, %s958_s18 }
  0x40   :  { %p703_p13 = scmp.ne.s32.totalorder %s958_s18, %s702_s17  ;;  %p708_p1 = scmp.lt.s32.totalorder %s702_s17, %s702_s17 }
  0x42   :  { %p709_p2 = por %p708_p1, %p707_p0 }
  0x44   :  { %p710_p3 = pnand %p709_p2, %p703_p13 }
  0x46   :  { %713 = shalt.err (!%p710_p3)
}
  0x47   :  { %105 = dma.hbm_to_vmem [thread:$0]  %s1116_s7, 1024, %s958_s18, [#allocation15], %s860_s1, %s860_s1, %s861_s10  }
  0x48   :  { %s864_s19 = smov [#allocation2]   ;;  %s714_s23 = scalar_lea.hbm %s1109_s0, 256 }
  0x49   :  { %s25_s20 = sshll.u32 %s864_s19, 4  ;;  %p715_p4 = scmp.ne.s32.totalorder %s1109_s0, %s714_s23  ;;  %s26_s20 = int_to_ptr.vmem [resolvable:$true] %s25_s20 }
  0x4a   :  { %p718_p5 = scmp.lt.u32.totalorder %s714_s23, %s1109_s0 }
  0x4c   :  { %p720_p6 = pnand %p718_p5, %p715_p4 }
  0x4e   :  { %723 = shalt.err (!%p720_p6)
}
  0x4f   :  { %s724_s26 = scalar_lea.vmem %s26_s20, 256  ;;  %p729_p8 = scmp.lt.s32.totalorder %s26_s20, %s26_s20 }
  0x50   :  { %p725_p7 = scmp.ne.s32.totalorder %s26_s20, %s724_s26  ;;  %p730_p9 = scmp.lt.s32.totalorder %s724_s26, %s724_s26 }
  0x52   :  { %p731_p10 = por %p730_p9, %p729_p8 }
  0x54   :  { %p732_p11 = pnand %p731_p10, %p725_p7 }
  0x56   :  { %735 = shalt.err (!%p732_p11)
}
  0x57   :  { %s865_s7 = smov 128   ;;  %s866_s1 = smov 8  }
  0x58   :  { %31 = dma.hbm_to_vmem [thread:$0]  %s1109_s0, 256, %s26_s20, [#allocation3], %s865_s7, %s865_s7, %s866_s1  }
  0x59   :  { %s867_s27 = smov [#allocation7]   ;;  %s868_s29 = smov [#allocation10]  }
  0x5a   :  { %s48_s28 = sshll.u32 %s867_s27, 4  ;;  %s70_s30 = sshll.u32 %s868_s29, 4  ;;  %s49_s28 = int_to_ptr.vmem [resolvable:$true] %s48_s28  ;;  %s71_s30 = int_to_ptr.vmem [resolvable:$true] %s70_s30 }
  0x5b   :  { %s736_s14 = scalar_lea.hbm %s1111_s2, 16 }
  0x5c   :  { %p737_p12 = scmp.ne.s32.totalorder %s1111_s2, %s736_s14  ;;  %p740_p13 = scmp.lt.u32.totalorder %s736_s14, %s1111_s2 }
  0x5e   :  { %p742_p0 = pnand %p740_p13, %p737_p12 }
  0x60   :  { %745 = shalt.err (!%p742_p0)
}
  0x61   :  { %s746_s0 = scalar_lea.vmem %s49_s28, 16  ;;  %s750_s19 = scalar_lea.vmem %s49_s28, 32 }
  0x62   :  { %p747_p1 = scmp.ne.s32.totalorder %s49_s28, %s746_s0  ;;  %p751_p2 = scmp.lt.s32.totalorder %s49_s28, %s49_s28 }
  0x63   :  { %p752_p3 = scmp.lt.s32.totalorder %s750_s19, %s746_s0 }
  0x65   :  { %p753_p4 = por %p752_p3, %p751_p2 }
  0x67   :  { %p754_p5 = pnand %p753_p4, %p747_p1 }
  0x69   :  { %757 = shalt.err (!%p754_p5)
}
  0x6a   :  { %51 = dma.hbm_to_vmem [thread:$0]  %s1111_s2, 16, %s49_s28, [#allocation6]  }
  0x6b   :  { %s758_s24 = scalar_lea.hbm %s1113_s4, 16 }
  0x6c   :  { %p759_p6 = scmp.ne.s32.totalorder %s1113_s4, %s758_s24  ;;  %p762_p7 = scmp.lt.u32.totalorder %s758_s24, %s1113_s4 }
  0x6e   :  { %p764_p8 = pnand %p762_p7, %p759_p6 }
  0x70   :  { %767 = shalt.err (!%p764_p8)
}
  0x71   :  { %s768_s10 = scalar_lea.vmem %s71_s30, 16  ;;  %s772_s18 = scalar_lea.vmem %s71_s30, 32 }
  0x72   :  { %p769_p9 = scmp.ne.s32.totalorder %s71_s30, %s768_s10  ;;  %p773_p10 = scmp.lt.s32.totalorder %s71_s30, %s71_s30 }
  0x73   :  { %p774_p11 = scmp.lt.s32.totalorder %s772_s18, %s768_s10 }
  0x75   :  { %p775_p12 = por %p774_p11, %p773_p10 }
  0x77   :  { %p776_p13 = pnand %p775_p12, %p769_p9 }
  0x79   :  { %779 = shalt.err (!%p776_p13)
}
  0x7a   :  { %73 = dma.hbm_to_vmem [thread:$0]  %s1113_s4, 16, %s71_s30, [#allocation9]  }
  0x7b   :  { %s869_s28 = smov [#allocation13]   ;;  %s870_s11 = smov [#allocation16]  }
  0x7c   :  { %s90_s29 = sshll.u32 %s869_s28, 4  ;;  %s112_s13 = sshll.u32 %s870_s11, 4  ;;  %s91_s29 = int_to_ptr.vmem [resolvable:$true] %s90_s29  ;;  %s113_s13 = int_to_ptr.vmem [resolvable:$true] %s112_s13 }
  0x7d   :  { %s780_s17 = scalar_lea.hbm %s1115_s6, 16 }
  0x7e   :  { %p781_p0 = scmp.ne.s32.totalorder %s1115_s6, %s780_s17  ;;  %p784_p1 = scmp.lt.u32.totalorder %s780_s17, %s1115_s6 }
  0x80   :  { %p786_p2 = pnand %p784_p1, %p781_p0 }
  0x82   :  { %789 = shalt.err (!%p786_p2)
}
  0x83   :  { %s790_s4 = scalar_lea.vmem %s91_s29, 16  ;;  %s794_s30 = scalar_lea.vmem %s91_s29, 32 }
  0x84   :  { %p791_p3 = scmp.ne.s32.totalorder %s91_s29, %s790_s4  ;;  %p795_p4 = scmp.lt.s32.totalorder %s91_s29, %s91_s29 }
  0x85   :  { %p796_p5 = scmp.lt.s32.totalorder %s794_s30, %s790_s4 }
  0x87   :  { %p797_p6 = por %p796_p5, %p795_p4 }
  0x89   :  { %p798_p7 = pnand %p797_p6, %p791_p3 }
  0x8b   :  { %801 = shalt.err (!%p798_p7)
}
  0x8c   :  { %93 = dma.hbm_to_vmem [thread:$0]  %s1115_s6, 16, %s91_s29, [#allocation12]  }
  0x8d   :  { %s802_s24 = scalar_lea.hbm %s1117_s8, 16 }
  0x8e   :  { %p803_p8 = scmp.ne.s32.totalorder %s1117_s8, %s802_s24  ;;  %p806_p9 = scmp.lt.u32.totalorder %s802_s24, %s1117_s8 }
  0x90   :  { %p808_p10 = pnand %p806_p9, %p803_p8 }
  0x92   :  { %811 = shalt.err (!%p808_p10)
}
  0x93   :  { %s812_s10 = scalar_lea.vmem %s113_s13, 16  ;;  %s816_s18 = scalar_lea.vmem %s113_s13, 32 }
  0x94   :  { %p813_p11 = scmp.ne.s32.totalorder %s113_s13, %s812_s10  ;;  %p817_p12 = scmp.lt.s32.totalorder %s113_s13, %s113_s13 }
  0x95   :  { %p818_p13 = scmp.lt.s32.totalorder %s816_s18, %s812_s10 }
  0x97   :  { %p819_p0 = por %p818_p13, %p817_p12 }
  0x99   :  { %p820_p1 = pnand %p819_p0, %p813_p11 }
  0x9b   :  { %823 = shalt.err (!%p820_p1)
}
  0x9c   :  { %115 = dma.hbm_to_vmem [thread:$0]  %s1117_s8, 16, %s113_s13, [#allocation15]  }
  0x9d   :  { %846 = dma.done.wait [#allocation3], 256  }
  0x9e   :  { %847 = vsyncadd [#allocation3], 4294967040 }
  0x9f   :  { %848 = dma.done.wait [#allocation6], 32  }
  0xa0   :  { %849 = vsyncadd [#allocation6], 4294967264 }
  0xa1   :  { %850 = dma.done.wait [#allocation9], 1040  }
  0xa2   :  { %851 = vsyncadd [#allocation9], 4294966256 }
  0xa3   :  { %852 = dma.done.wait [#allocation12], 32  }
  0xa4   :  { %853 = vsyncadd [#allocation12], 4294967264 }
  0xa5   :  { %854 = dma.done.wait [#allocation15], 1040  }
  0xa6   :  { %855 = vsyncadd [#allocation15], 4294966256  ;;  %v1055_v0 = vld [vmem:[#allocation2] sm:$0xff]  ;;  %v1057_v1 = vld [vmem:[#allocation2 + $0x8] sm:$0xff]  ;;  %v871_v3 = vmov 0.0   ;;  %v152_v4 = vlaneseq  ;;  %vm872_vm1 = vmmov 0  }
  0xa7   :  { %155 = vadd.xlane.f32.xlu0 %v1055_v0  ;;  %v598_v2 = vld [vmem:[#allocation8] sm:$0xff]   ;;  %542 = vmatprep.subr.bf16.mxu0 %v871_v3  ;;  %v599_v16 = vld [vmem:[#allocation8 + $0x8] sm:$0xff]   ;;  %v600_v17 = vld [vmem:[#allocation8 + $0x10] sm:$0xff]   ;;  %s873_s8 = smov [#allocation17]  }
  0xa8   :  { %562 = vmatprep.subr.bf16.mxu1 %v871_v3  ;;  %543 = vmatpush3.bf16.msra.mxu0 %v598_v2  ;;  %v1064_v5 = vand.u32 127, %v152_v4  ;;  %v601_v18 = vld [vmem:[#allocation8 + $0x18] sm:$0xff]   ;;  %v602_v19 = vld [vmem:[#allocation8 + $0x20] sm:$0xff]   ;;  %v603_v20 = vld [vmem:[#allocation8 + $0x28] sm:$0xff]   ;;  %s486_s27 = sshll.u32 %s873_s8, 4  ;;  %s487_s27 = int_to_ptr.vmem [resolvable:$true] %s486_s27 }
  0xa9   :  { %544 = vmatprep.subr.bf16.mxu0 %v871_v3  ;;  %558 = vmatprep.mubr.msk.bf16.mxu0 %vm872_vm1, %v871_v3  ;;  %v604_v21 = vld [vmem:[#allocation8 + $0x30] sm:$0xff]   ;;  %v605_v22 = vld [vmem:[#allocation8 + $0x38] sm:$0xff]   ;;  %v504_v40 = vld [vmem:[#allocation10] ss:$0 sm:$0xff]  ;;  %s824_s28 = scalar_lea.vmem %s487_s27, 256  ;;  %p829_p3 = scmp.lt.s32.totalorder %s487_s27, %s487_s27 }
  0xaa   :  { %vm154_vm0 = vcmp.lt.s32.totalorder %v1064_v5, 32  ;;  %578 = vmatprep.mubr.msk.bf16.mxu1 %vm872_vm1, %v871_v3  ;;  %v502_v31 = vld [vmem:[#allocation5] ss:$0 sm:$0xff]  ;;  %v503_v35 = vld [vmem:[#allocation7] ss:$0 sm:$0xff]  ;;  %p825_p2 = scmp.ne.s32.totalorder %s487_s27, %s824_s28  ;;  %p830_p4 = scmp.lt.s32.totalorder %s824_s28, %s824_s28 }
  0xab   :  { %157 = vadd.xlane.f32.xlu0 %v1057_v1  ;;  %v613_v5 = vld [vmem:[#allocation14 + $0x38] sm:$0xff]  }
  0xac   :  { %545 = vmatpush3.bf16.msra.mxu0 %v599_v16  ;;  %p831_p5 = por %p830_p4, %p829_p3 }
  0xad   :  { %546 = vmatprep.subr.bf16.mxu0 %v871_v3 }
  0xae   :  { %p832_p6 = pnand %p831_p5, %p825_p2 }
  0xb0   :  { %547 = vmatpush3.bf16.msra.mxu0 %v600_v17  ;;  %v608_v17 = vld [vmem:[#allocation14 + $0x10] sm:$0xff]  }
  0xb1   :  { %548 = vmatprep.subr.bf16.mxu0 %v871_v3 }
  0xb4   :  { %549 = vmatpush3.bf16.msra.mxu0 %v601_v18  ;;  %v609_v18 = vld [vmem:[#allocation14 + $0x18] sm:$0xff]  }
  0xb5   :  { %550 = vmatprep.subr.bf16.mxu0 %v871_v3 }
  0xb8   :  { %551 = vmatpush3.bf16.msra.mxu0 %v602_v19  ;;  %v610_v19 = vld [vmem:[#allocation14 + $0x20] sm:$0xff]  }
  0xb9   :  { %552 = vmatprep.subr.bf16.mxu0 %v871_v3 }
  0xbc   :  { %553 = vmatpush3.bf16.msra.mxu0 %v603_v20  ;;  %v611_v20 = vld [vmem:[#allocation14 + $0x28] sm:$0xff]  }
  0xbd   :  { %554 = vmatprep.subr.bf16.mxu0 %v871_v3 }
  0xc0   :  { %555 = vmatpush3.bf16.msra.mxu0 %v604_v21  ;;  %v612_v21 = vld [vmem:[#allocation14 + $0x30] sm:$0xff]  }
  0xc1   :  { %556 = vmatprep.subr.bf16.mxu0 %v871_v3 }
  0xc4   :  { %557 = vmatpush3.bf16.msra.mxu0 %v605_v22 }
 0x134   :  { %v156_v6 = vpop.xlane.xlu0 %155 }
 0x135   :  { %v159_v7 = vmul.f32 0.03125, %v156_v6 }
 0x137   :  { %v161_v8 = vsub.f32 %v1055_v0, %v159_v7  ;;  %v606_v7 = vld [vmem:[#allocation14] sm:$0xff]  }
 0x138   :  { %v158_v9 = vpop.xlane.xlu0 %157  ;;  %563 = vmatpush3.bf16.msra.mxu1 %v606_v7 }
 0x139   :  { %v160_v10 = vmul.f32 0.03125, %v158_v9  ;;  %v163_v11 = vsel %vm154_vm0, %v161_v8, 0.0  ;;  %v607_v8 = vld [vmem:[#allocation14 + $0x8] sm:$0xff]   ;;  %564 = vmatprep.subr.bf16.mxu1 %v871_v3 }
 0x13a   :  { %v165_v12 = vmul.f32 %v163_v11, %v163_v11 }
 0x13b   :  { %v162_v13 = vsub.f32 %v1057_v1, %v160_v10 }
 0x13c   :  { %167 = vadd.xlane.f32.xlu1 %v165_v12  ;;  %565 = vmatpush3.bf16.msra.mxu1 %v607_v8 }
 0x13d   :  { %v164_v14 = vsel %vm154_vm0, %v162_v13, 0.0  ;;  %566 = vmatprep.subr.bf16.mxu1 %v871_v3 }
 0x13e   :  { %v166_v15 = vmul.f32 %v164_v14, %v164_v14 }
 0x140   :  { %169 = vadd.xlane.f32.xlu1 %v166_v15  ;;  %567 = vmatpush3.bf16.msra.mxu1 %v608_v17 }
 0x141   :  { %568 = vmatprep.subr.bf16.mxu1 %v871_v3 }
 0x144   :  { %569 = vmatpush3.bf16.msra.mxu1 %v609_v18 }
 0x145   :  { %570 = vmatprep.subr.bf16.mxu1 %v871_v3 }
 0x148   :  { %571 = vmatpush3.bf16.msra.mxu1 %v610_v19 }
 0x149   :  { %572 = vmatprep.subr.bf16.mxu1 %v871_v3 }
 0x14c   :  { %573 = vmatpush3.bf16.msra.mxu1 %v611_v20 }
 0x14d   :  { %574 = vmatprep.subr.bf16.mxu1 %v871_v3 }
 0x150   :  { %575 = vmatpush3.bf16.msra.mxu1 %v612_v21 }
 0x151   :  { %576 = vmatprep.subr.bf16.mxu1 %v871_v3 }
 0x154   :  { %577 = vmatpush3.bf16.msra.mxu1 %v613_v5 }
 0x1c9   :  { %v168_v23 = vpop.xlane.xlu1 %167 }
 0x1ca   :  { %v171_v24 = vmul.f32 0.03125, %v168_v23 }
 0x1cc   :  { %v173_v25 = vadd.f32 1e-05, %v171_v24 }
 0x1cd   :  { %v170_v26 = vpop.xlane.xlu1 %169 }
 0x1ce   :  { %614 = vrsqrt.f32 %v173_v25  ;;  %v172_v27 = vmul.f32 0.03125, %v170_v26 }
 0x1d0   :  { %v174_v28 = vadd.f32 1e-05, %v172_v27 }
 0x1d2   :  { %616 = vrsqrt.f32 %v174_v28 }
 0x1d8   :  { %v615_v29 = vpop.eup %614 }
 0x1d9   :  { %v177_v30 = vmul.f32 %v615_v29, %v163_v11  ;;  %v513_v29 = vld [vmem:[#allocation11] ss:$0 sm:$0xff] }
 0x1db   :  { %v185_v34 = vmul.f32 %v502_v31, %v177_v30 }
 0x1dc   :  { %v617_v32 = vpop.eup %616 }
 0x1dd   :  { %v178_v33 = vmul.f32 %v617_v32, %v164_v14  ;;  %v193_v37 = vadd.f32 %v503_v35, %v185_v34  ;;  %v514_v34 = vld [vmem:[#allocation13] ss:$0 sm:$0xff] }
 0x1df   :  { %v186_v36 = vmul.f32 %v502_v31, %v178_v33 }
 0x1e1   :  { %v194_v38 = vadd.f32 %v503_v35, %v186_v36 }
 0x1e3   :  { %v195_v39 = vpack.c.bf16 %v194_v38, %v193_v37  ;;  %v515_v38 = vld [vmem:[#allocation16] ss:$0 sm:$0xff] }
 0x1e5   :  { %559 = vmatmul.mubr.bf16.vlgmr.msra.gmra.mrb[0].mxu0 %v195_v39 }
 0x2b8   :  { %v300_v41 = vpop.f32.mrb[0].mxu0 }
 0x2b9   :  { %v301_v42 = vadd.f32 %v504_v40, %v300_v41  ;;  %v560_v43 = vpop.f32.mrb[1].mxu0 }
 0x2ba   :  { %v303_v44 = vpop.f32.mrb[2].mxu0 }
 0x2bb   :  { %v309_v45 = vmul.f32 0.044715, %v301_v42  ;;  %v304_v46 = vadd.f32 %v504_v40, %v303_v44  ;;  %v561_v47 = vpop.f32.mrb[3].mxu0  ;;  %v307_v58 = vmul.f32 0.5, %v301_v42 }
 0x2bd   :  { %v311_v48 = vmul.f32 %v309_v45, %v301_v42  ;;  %v310_v49 = vmul.f32 0.044715, %v304_v46  ;;  %v308_v62 = vmul.f32 0.5, %v304_v46 }
 0x2bf   :  { %v312_v50 = vmul.f32 %v310_v49, %v304_v46  ;;  %v313_v51 = vmul.f32 %v311_v48, %v301_v42 }
 0x2c1   :  { %v315_v52 = vadd.f32 %v313_v51, %v301_v42  ;;  %v314_v53 = vmul.f32 %v312_v50, %v304_v46 }
 0x2c3   :  { %v317_v54 = vmul.f32 0.7978846, %v315_v52  ;;  %v316_v55 = vadd.f32 %v314_v53, %v304_v46 }
 0x2c5   :  { %618 = vtanh.f32 %v317_v54  ;;  %v318_v56 = vmul.f32 0.7978846, %v316_v55 }
 0x2c7   :  { %620 = vtanh.f32 %v318_v56 }
 0x2cf   :  { %v619_v57 = vpop.eup %618 }
 0x2d0   :  { %v321_v59 = vadd.f32 1.0, %v619_v57 }
 0x2d1   :  { %v621_v60 = vpop.eup %620 }
 0x2d2   :  { %v323_v61 = vmul.f32 %v321_v59, %v307_v58  ;;  %v322_v63 = vadd.f32 1.0, %v621_v60 }
 0x2d4   :  { %v325_v2 = vadd.f32 %v323_v61, %v1055_v0  ;;  %v324_v4 = vmul.f32 %v322_v63, %v308_v62 }
 0x2d6   :  { %327 = vadd.xlane.f32.xlu0 %v325_v2  ;;  %v326_v6 = vadd.f32 %v324_v4, %v1057_v1 }
 0x2d8   :  { %329 = vadd.xlane.f32.xlu1 %v326_v6 }
 0x363   :  { %v328_v9 = vpop.xlane.xlu0 %327 }
 0x364   :  { %v331_v10 = vmul.f32 0.03125, %v328_v9 }
 0x365   :  { %v330_v11 = vpop.xlane.xlu1 %329 }
 0x366   :  { %v333_v12 = vsub.f32 %v325_v2, %v331_v10  ;;  %v332_v13 = vmul.f32 0.03125, %v330_v11 }
 0x368   :  { %v334_v14 = vsub.f32 %v326_v6, %v332_v13  ;;  %v335_v0 = vsel %vm154_vm0, %v333_v12, 0.0 }
 0x369   :  { %v337_v15 = vmul.f32 %v335_v0, %v335_v0 }
 0x36a   :  { %v336_v1 = vsel %vm154_vm0, %v334_v14, 0.0 }
 0x36b   :  { %339 = vadd.xlane.f32.xlu0 %v337_v15  ;;  %v338_v16 = vmul.f32 %v336_v1, %v336_v1 }
 0x36d   :  { %341 = vadd.xlane.f32.xlu1 %v338_v16 }
 0x3f8   :  { %v340_v22 = vpop.xlane.xlu0 %339 }
 0x3f9   :  { %v343_v23 = vmul.f32 0.03125, %v340_v22 }
 0x3fa   :  { %v342_v24 = vpop.xlane.xlu1 %341 }
 0x3fb   :  { %v345_v25 = vadd.f32 1e-05, %v343_v23  ;;  %v344_v26 = vmul.f32 0.03125, %v342_v24 }
 0x3fd   :  { %622 = vrsqrt.f32 %v345_v25  ;;  %v346_v27 = vadd.f32 1e-05, %v344_v26 }
 0x3ff   :  { %624 = vrsqrt.f32 %v346_v27 }
 0x407   :  { %v623_v28 = vpop.eup %622 }
 0x408   :  { %v349_v30 = vmul.f32 %v623_v28, %v335_v0 }
 0x409   :  { %v625_v31 = vpop.eup %624 }
 0x40a   :  { %v350_v32 = vmul.f32 %v625_v31, %v336_v1  ;;  %v357_v33 = vmul.f32 %v513_v29, %v349_v30 }
 0x40c   :  { %v358_v35 = vmul.f32 %v513_v29, %v350_v32  ;;  %v365_v36 = vadd.f32 %v514_v34, %v357_v33 }
 0x40e   :  { %v366_v37 = vadd.f32 %v514_v34, %v358_v35 }
 0x410   :  { %v367_v3 = vpack.c.bf16 %v366_v37, %v365_v36 }
 0x412   :  { %579 = vmatmul.mubr.bf16.vlgmr.msra.gmra.mrb[0].mxu1 %v367_v3 }
 0x4e5   :  { %v472_v39 = vpop.f32.mrb[0].mxu1 }
 0x4e6   :  { %v473_v40 = vadd.f32 %v515_v38, %v472_v39  ;;  %v580_v41 = vpop.f32.mrb[1].mxu1 }
 0x4e7   :  { %v475_v42 = vpop.f32.mrb[2].mxu1 }
 0x4e8   :  { %479 = vst [vmem:[#allocation17] sm:$0xff] %v473_v40  ;;  %v476_v43 = vadd.f32 %v515_v38, %v475_v42  ;;  %v581_v44 = vpop.f32.mrb[3].mxu1 }
 0x4ea   :  { %480 = vst [vmem:[#allocation17 + $0x8] sm:$0xff] %v476_v43 }
 0x4eb   :  { %835 = shalt.err (!%p832_p6)
}
 0x4ec   :  { %s836_s13 = scalar_lea.hbm %s1118_s9, 256 }
 0x4ed   :  { %p837_p7 = scmp.ne.s32.totalorder %s1118_s9, %s836_s13  ;;  %p840_p8 = scmp.lt.u32.totalorder %s836_s13, %s1118_s9 }
 0x4ef   :  { %p842_p9 = pnand %p840_p8, %p837_p7 }
 0x4f1   :  { %845 = shalt.err (!%p842_p9)
}
 0x4f2   :  { %492 = dma.vmem_to_hbm [thread:$0]  %s487_s27, 256, %s1118_s9, [#allocation4], %s865_s7, %s865_s7, %s866_s1  }
 0x4f3   :  { %856 = dma.done.wait [#allocation4], 256  }
 0x4f4   :  { %857 = vsyncadd [#allocation4], 4294967040 }
 0x4f5   :  { %496 = vsyncpa [#allocation3], 1 }
 0x4f6   :  { %497 = vsyncpa [#allocation6], 1 }
 0x4f7   :  { %498 = vsyncpa [#allocation9], 1 }
 0x4f8   :  { %499 = vsyncpa [#allocation12], 1 }
 0x4f9   :  { %500 = vsyncpa [#allocation15], 1 }
 0x4fa   :  { %501 = vsyncpa [#allocation4], 1 }

</bundles_post_ra>
